<compile_context>
chip_gen: v7x
topology: tpu7x:2x2x1
jax: 0.10.0
libtpu: 0.0.40
codegen_flags: <defaults>
</compile_context>

<pallas_src>
import functools

import jax
import jax.numpy as jnp
from jax import lax
from jax.experimental import pallas as pl
from jax.experimental.pallas import tpu as pltpu


def _round_up(n, m):
    return ((n + m - 1) // m) * m


def _gru_kernel(x_ref, lens_ref, wih_ref, whh_ref, ball_ref, bhhn_ref,
                wout_ref, bout_ref, out_ref, gi_ref, h_ref,
                *, unroll, compute_dtype):
    """One (batch-block b, time-chunk c) grid step.

    Kernel-visible shapes (padded / lane-aligned):
      x    (TC*BB, I)    compute dtype      lens (BB, 1) int32
      wih  (I, 3*HP)     compute dtype      whh  (HP, 3*HP) compute dtype
      ball (1, 3*HP) f32 (b_ih with b_hh_r/b_hh_z folded in)
      bhhn (1, HP)   f32 (b_hh of the n gate; must stay inside r*(...))
      wout (HP, OP)      compute dtype      bout (1, OP) f32
      out  (BB, OP) f32
      gi   (TC*BB, 3*HP) f32 scratch        h (BB, HP) f32 scratch (carries
                                             across time chunks)
    """
    c = pl.program_id(1)
    HP = whh_ref.shape[0]
    BB = lens_ref.shape[0]
    TC = x_ref.shape[0] // BB

    @pl.when(c == 0)
    def _init():                                   # init_hidden(): zeros
        h_ref[...] = jnp.zeros_like(h_ref)

    # Input projection for the whole chunk as one MXU matmul (f32 accumulate).
    gi_ref[...] = (jnp.dot(x_ref[...], wih_ref[...],
                           preferred_element_type=jnp.float32)
                   + ball_ref[...])

    lens = lens_ref[...]                           # (BB, 1) int32
    bhh_n = bhhn_ref[...]                          # (1, HP)
    t0 = c * TC

    def step(s, h):
        row = pl.multiple_of(s * BB, BB)           # sublane-aligned slice
        gi = gi_ref[pl.ds(row, BB), :]             # (BB, 3*HP)
        gh = jnp.dot(h.astype(compute_dtype), whh_ref[...],
                     preferred_element_type=jnp.float32)
        # Gate slices land on 128-lane boundaries (HP is a multiple of 128).
        r = jax.nn.sigmoid(gi[:, 0:HP] + gh[:, 0:HP])
        z = jax.nn.sigmoid(gi[:, HP:2 * HP] + gh[:, HP:2 * HP])
        n = jnp.tanh(gi[:, 2 * HP:3 * HP] + r * (gh[:, 2 * HP:3 * HP] + bhh_n))
        h_new = n + z * (h - n)                    # == (1-z)*n + z*h
        # pack_padded_sequence semantics: freeze h once t >= seq_lengths[b].
        return jnp.where(lens > (t0 + s), h_new, h)

    h_ref[...] = lax.fori_loop(0, TC, step, h_ref[...], unroll=unroll)

    @pl.when(c == pl.num_programs(1) - 1)
    def _finalize():                               # self.out(hidden[-1])
        out_ref[...] = (jnp.dot(h_ref[...].astype(compute_dtype), wout_ref[...],
                                preferred_element_type=jnp.float32)
                        + bout_ref[...]).astype(out_ref.dtype)


def _pad_gates(w, rows_to, H, HP):
    """(rows, 3H) gate-concatenated [r|z|n] -> (rows_to, 3*HP), zero padded so
    each gate occupies its own 128-lane-aligned block."""
    rows = w.shape[0]
    out = jnp.zeros((rows_to, 3 * HP), jnp.float32)
    for g in range(3):
        out = out.at[:rows, g * HP:g * HP + H].set(w[:, g * H:(g + 1) * H])
    return out


def gru_forward(x, seq_lengths, params, *, compute_dtype=jnp.bfloat16,
                time_chunk=32, batch_block=8):
    """x: (B, T, I) batch_first (PyTorch convention); seq_lengths: (B,) int32.
    compute_dtype: dtype fed to the MXU (bf16 by default; accumulation and all
    gate math stay f32)."""
    B, T, I = x.shape
    H = params["whh"].shape[0]
    O = params["wout"].shape[1]

    # Padded / blocked sizes.
    BB = max(8, _round_up(batch_block, 8))          # sublane-aligned batch slab
    Bp = _round_up(max(B, 1), BB)
    NB = Bp // BB                                   # "parallel" grid axis
    HP = _round_up(H, 128)                          # lane-aligned gate width
    G = 3 * HP
    OP = _round_up(O, 128)                          # lane-dense output store
    TC = min(_round_up(max(T, 1), 4), _round_up(time_chunk, 4))
    Tp = _round_up(T, TC)
    NC = Tp // TC                                   # "arbitrary" grid axis

    # x -> (NB, Tp*BB, I): per batch-block, time-major rows of BB batch rows.
    x_tm = jnp.transpose(x.astype(jnp.float32), (1, 0, 2))        # (T, B, I)
    x_tm = jnp.pad(x_tm, ((0, Tp - T), (0, Bp - B), (0, 0)))      # (Tp, Bp, I)
    x_blk = (x_tm.reshape(Tp, NB, BB, I)
                 .transpose(1, 0, 2, 3)
                 .reshape(NB, Tp * BB, I)
                 .astype(compute_dtype))

    lens = jnp.pad(seq_lengths.astype(jnp.int32), (0, Bp - B)).reshape(NB, BB, 1)

    wih = params["wih"].astype(jnp.float32)
    whh = params["whh"].astype(jnp.float32)
    bih = params["bih"].astype(jnp.float32).reshape(1, 3 * H)
    bhh = params["bhh"].astype(jnp.float32).reshape(1, 3 * H)

    # Fold b_hh for r and z into the input bias (constant w.r.t. h); b_hh for
    # the n gate must stay inside r*(h@W_hn + b_hn) to match PyTorch nn.GRU.
    b_fold = bih.at[:, 0:2 * H].add(bhh[:, 0:2 * H])
    ball = _pad_gates(b_fold, 1, H, HP)                                 # (1, G)
    bhhn = jnp.zeros((1, HP), jnp.float32).at[:, :H].set(bhh[:, 2 * H:3 * H])

    wih_p = _pad_gates(wih, I, H, HP).astype(compute_dtype)             # (I, G)
    whh_p = _pad_gates(whh, HP, H, HP).astype(compute_dtype)            # (HP, G)
    wout_p = (jnp.zeros((HP, OP), jnp.float32)
              .at[:H, :O].set(params["wout"].astype(jnp.float32))
              .astype(compute_dtype))
    bout_p = jnp.zeros((1, OP), jnp.float32).at[:, :O].set(
        params["bout"].astype(jnp.float32).reshape(1, O))

    # Explicit VMEM budget: chunked x + weights (double-buffered, worst case)
    # + biases/lens/out + scratch, with 1.5x headroom.  Bounded O(TC), not O(T).
    cdb = jnp.dtype(compute_dtype).itemsize
    vmem_bytes = 2 * (TC * BB * I * cdb
                      + (I * G + HP * G + HP * OP) * cdb
                      + (G + HP + OP + BB * OP + BB) * 4)
    vmem_bytes += (TC * BB * G + BB * HP) * 4
    vmem_bytes = int(min(max(vmem_bytes * 3 // 2 + (1 << 20), 16 << 20), 100 << 20))

    kernel = functools.partial(_gru_kernel, unroll=min(TC, 8),
                               compute_dtype=compute_dtype)

    out_p = pl.pallas_call(
        kernel,
        out_shape=jax.ShapeDtypeStruct((NB, BB, OP), jnp.float32),
        grid=(NB, NC),
        in_specs=[
            pl.BlockSpec((None, TC * BB, I), lambda b, c: (b, c, 0)),   # x chunk
            pl.BlockSpec((None, BB, 1), lambda b, c: (b, 0, 0)),        # lens
            pl.BlockSpec((I, G), lambda b, c: (0, 0)),                  # W_ih
            pl.BlockSpec((HP, G), lambda b, c: (0, 0)),                 # W_hh
            pl.BlockSpec((1, G), lambda b, c: (0, 0)),                  # b_ih(+b_hh_rz)
            pl.BlockSpec((1, HP), lambda b, c: (0, 0)),                 # b_hh_n
            pl.BlockSpec((HP, OP), lambda b, c: (0, 0)),                # W_out
            pl.BlockSpec((1, OP), lambda b, c: (0, 0)),                 # b_out
        ],
        out_specs=pl.BlockSpec((None, BB, OP), lambda b, c: (b, 0, 0)),
        scratch_shapes=[
            pltpu.VMEM((TC * BB, G), jnp.float32),   # gi for the current chunk
            pltpu.VMEM((BB, HP), jnp.float32),       # h carry across chunks
        ],
        compiler_params=pltpu.CompilerParams(
            dimension_semantics=("parallel", "arbitrary"),
            vmem_limit_bytes=vmem_bytes),
    )(x_blk, lens, wih_p, whh_p, ball, bhhn, wout_p, bout_p)

    return out_p.reshape(Bp, OP)[:B, :O]


def gru_reference(x, seq_lengths, params):
    """Pure-JAX f32 reference (PyTorch GRU cell equations + packed-length mask)."""
    B, T, I = x.shape
    H = params["whh"].shape[0]
    h0 = jnp.zeros((B, H), jnp.float32)
    mask = (jnp.arange(T)[:, None] < seq_lengths[None, :]).astype(jnp.float32)
    x_tm = jnp.transpose(x, (1, 0, 2)).astype(jnp.float32)

    def step(h, inp):
        x_t, m_t = inp
        gi = x_t @ params["wih"] + params["bih"]
        gh = h @ params["whh"] + params["bhh"]
        r = jax.nn.sigmoid(gi[:, :H] + gh[:, :H])
        z = jax.nn.sigmoid(gi[:, H:2 * H] + gh[:, H:2 * H])
        n = jnp.tanh(gi[:, 2 * H:] + r * gh[:, 2 * H:])
        h_new = (1.0 - z) * n + z * h
        h = m_t[:, None] * h_new + (1.0 - m_t[:, None]) * h
        return h, None

    h_final, _ = lax.scan(step, h0, (x_tm, mask))
    return h_final @ params["wout"] + params["bout"]


if __name__ == "__main__":
    B, T, I, H, O = 2, 8, 16, 32, 8

    key = jax.random.PRNGKey(0)
    ks = jax.random.split(key, 8)
    s_gru = float(1.0 / jnp.sqrt(H))   # PyTorch GRU init: U(-1/sqrt(H), 1/sqrt(H))
    s_lin = float(1.0 / jnp.sqrt(H))   # Linear init: U(-1/sqrt(fan_in), ...)

    params = {
        "wih":  jax.random.uniform(ks[0], (I, 3 * H), jnp.float32, -s_gru, s_gru),
        "whh":  jax.random.uniform(ks[1], (H, 3 * H), jnp.float32, -s_gru, s_gru),
        "bih":  jax.random.uniform(ks[2], (1, 3 * H), jnp.float32, -s_gru, s_gru),
        "bhh":  jax.random.uniform(ks[3], (1, 3 * H), jnp.float32, -s_gru, s_gru),
        "wout": jax.random.uniform(ks[4], (H, O), jnp.float32, -s_lin, s_lin),
        "bout": jax.random.uniform(ks[5], (1, O), jnp.float32, -s_lin, s_lin),
    }

    x = jax.random.normal(ks[6], (B, T, I), jnp.float32)
    # pack_padded_sequence requires lengths sorted descending.
    seq_lengths = jnp.array([8, 5], dtype=jnp.int32)

    ref = gru_reference(x, seq_lengths, params)

    # (1) f32 matmul mode: exact parity with the f32 reference.
    out_f32 = jax.block_until_ready(
        gru_forward(x, seq_lengths, params, compute_dtype=jnp.float32))
    assert out_f32.shape == (B, O), out_f32.shape
    assert jnp.allclose(out_f32, ref, atol=2e-5, rtol=1e-4), (
        f"f32 max abs err = {jnp.max(jnp.abs(out_f32 - ref))}")

    # (2) default bf16-MXU mode (f32 accumulate / gate math): looser tolerance.
    out_bf16 = jax.block_until_ready(gru_forward(x, seq_lengths, params))
    assert out_bf16.shape == (B, O), out_bf16.shape
    assert jnp.allclose(out_bf16, ref, atol=5e-2, rtol=5e-2), (
        f"bf16 max abs err = {jnp.max(jnp.abs(out_bf16 - ref))}")

    # (3) Larger config exercising multiple time chunks, multiple batch blocks
    #     (grid (2, 2)), and batch/time padding.
    B2, T2 = 16, 40
    x2 = jax.random.normal(ks[7], (B2, T2, I), jnp.float32)
    lens2 = jnp.sort(jax.random.randint(ks[5], (B2,), 1, T2 + 1))[::-1]
    lens2 = lens2.astype(jnp.int32)
    ref2 = gru_reference(x2, lens2, params)
    out2 = jax.block_until_ready(
        gru_forward(x2, lens2, params, compute_dtype=jnp.float32, time_chunk=32))
    assert out2.shape == (B2, O), out2.shape
    assert jnp.allclose(out2, ref2, atol=5e-5, rtol=1e-4), (
        f"chunked f32 max abs err = {jnp.max(jnp.abs(out2 - ref2))}")

    print("KERNEL_OK")
</pallas_src>

<mosaic_0001>
module attributes {stable_mosaic.version = 11 : i64} {
  func.func @_gru_kernel(%arg0: i32, %arg1: i32, %arg2: memref<1x64x16xf32, #tpu.memory_space<vmem>>, %arg3: memref<1x8x1xi32, #tpu.memory_space<vmem>>, %arg4: memref<16x384xf32, #tpu.memory_space<vmem>>, %arg5: memref<128x384xf32, #tpu.memory_space<vmem>>, %arg6: memref<1x384xf32, #tpu.memory_space<vmem>>, %arg7: memref<1x128xf32, #tpu.memory_space<vmem>>, %arg8: memref<128x128xf32, #tpu.memory_space<vmem>>, %arg9: memref<1x128xf32, #tpu.memory_space<vmem>>, %arg10: memref<1x8x128xf32, #tpu.memory_space<vmem>>, %arg11: memref<64x384xf32, #tpu.memory_space<vmem>>, %arg12: memref<8x128xf32, #tpu.memory_space<vmem>>) attributes {dimension_semantics = [#tpu.dimension_semantics<parallel>, #tpu.dimension_semantics<arbitrary>], iteration_bounds = array<i64: 1, 1>, scalar_prefetch = 0 : i64, scratch_operands = 2 : i64, tpu.core_type = #tpu.core_type<tc>, window_params = [{transform_indices = @transform_0, window_bounds = array<i64: 1, 64, 16>}, {transform_indices = @transform_1, window_bounds = array<i64: 1, 8, 1>}, {pipeline_mode = #tpu.pipeline_mode<synchronous>, transform_indices = @transform_2, window_bounds = array<i64: 16, 384>}, {pipeline_mode = #tpu.pipeline_mode<synchronous>, transform_indices = @transform_3, window_bounds = array<i64: 128, 384>}, {pipeline_mode = #tpu.pipeline_mode<synchronous>, transform_indices = @transform_4, window_bounds = array<i64: 1, 384>}, {pipeline_mode = #tpu.pipeline_mode<synchronous>, transform_indices = @transform_5, window_bounds = array<i64: 1, 128>}, {pipeline_mode = #tpu.pipeline_mode<synchronous>, transform_indices = @transform_6, window_bounds = array<i64: 128, 128>}, {pipeline_mode = #tpu.pipeline_mode<synchronous>, transform_indices = @transform_7, window_bounds = array<i64: 1, 128>}, {transform_indices = @transform_8, window_bounds = array<i64: 1, 8, 128>}]} {
    %c0_i32 = arith.constant 0 : i32
    %0 = arith.cmpi eq, %arg1, %c0_i32 : i32
    %1 = arith.extui %0 : i1 to i32
    %c0_i32_0 = arith.constant 0 : i32
    %2 = arith.cmpi ne, %1, %c0_i32_0 : i32
    scf.if %2 {
      %cst_78 = arith.constant 0.000000e+00 : f32
      %324 = vector.broadcast %cst_78 : f32 to vector<8x128xf32>
      %c0_79 = arith.constant 0 : index
      %c0_80 = arith.constant 0 : index
      %325 = vector.load %arg12[%c0_79, %c0_80] : memref<8x128xf32, #tpu.memory_space<vmem>>, vector<8x128xf32>
      tpu.vector_store %arg12[%c0_79, %c0_80], %324 {strides = array<i32>} : memref<8x128xf32, #tpu.memory_space<vmem>>, vector<8x128xf32>,
    } else {
    }
    %c0 = arith.constant 0 : index
    %c0_1 = arith.constant 0 : index
    %c0_2 = arith.constant 0 : index
    %3 = vector.load %arg2[%c0, %c0_1, %c0_2] : memref<1x64x16xf32, #tpu.memory_space<vmem>>, vector<1x64x16xf32>
    %4 = vector.shape_cast %3 : vector<1x64x16xf32> to vector<64x16xf32>
    %c0_3 = arith.constant 0 : index
    %c0_4 = arith.constant 0 : index
    %5 = vector.load %arg4[%c0_3, %c0_4] : memref<16x384xf32, #tpu.memory_space<vmem>>, vector<16x384xf32>
    %cst = arith.constant dense<0.000000e+00> : vector<64x384xf32>
    %6 = tpu.matmul %4, %5, %cst {dimension_numbers = #tpu.dot_dimension_numbers<[1], [0], [0], [1], [0, 0, 1, 1], [], []>} : vector<64x16xf32>, vector<16x384xf32>, vector<64x384xf32> -> vector<64x384xf32>
    %c0_5 = arith.constant 0 : index
    %c0_6 = arith.constant 0 : index
    %7 = vector.load %arg6[%c0_5, %c0_6] : memref<1x384xf32, #tpu.memory_space<vmem>>, vector<1x384xf32>
    %8 = vector.broadcast %7 : vector<1x384xf32> to vector<64x384xf32>
    %9 = arith.addf %6, %8 : vector<64x384xf32>
    %c0_7 = arith.constant 0 : index
    %c0_8 = arith.constant 0 : index
    %10 = vector.load %arg11[%c0_7, %c0_8] : memref<64x384xf32, #tpu.memory_space<vmem>>, vector<64x384xf32>
    tpu.vector_store %arg11[%c0_7, %c0_8], %9 {strides = array<i32>} : memref<64x384xf32, #tpu.memory_space<vmem>>, vector<64x384xf32>,
    %c0_9 = arith.constant 0 : index
    %c0_10 = arith.constant 0 : index
    %c0_11 = arith.constant 0 : index
    %11 = vector.load %arg3[%c0_9, %c0_10, %c0_11] : memref<1x8x1xi32, #tpu.memory_space<vmem>>, vector<1x8x1xi32>
    %12 = vector.shape_cast %11 : vector<1x8x1xi32> to vector<8x1xi32>
    %c0_12 = arith.constant 0 : index
    %c0_13 = arith.constant 0 : index
    %13 = vector.load %arg7[%c0_12, %c0_13] : memref<1x128xf32, #tpu.memory_space<vmem>>, vector<1x128xf32>
    %c8_i32 = arith.constant 8 : i32
    %14 = arith.muli %arg1, %c8_i32 : i32
    %c0_14 = arith.constant 0 : index
    %c0_15 = arith.constant 0 : index
    %15 = vector.load %arg12[%c0_14, %c0_15] : memref<8x128xf32, #tpu.memory_space<vmem>>, vector<8x128xf32>
    %c0_i32_16 = arith.constant 0 : i32
    %c8_i32_17 = arith.constant 8 : i32
    %16 = arith.muli %c0_i32_16, %c8_i32_17 : i32
    %17 = tpu.assume_multiple %16, 8 : i32
    %18 = arith.index_cast %17 : i32 to index
    %c0_18 = arith.constant 0 : index
    %19 = vector.load %arg11[%18, %c0_18] : memref<64x384xf32, #tpu.memory_space<vmem>>, vector<8x384xf32>
    %c0_19 = arith.constant 0 : index
    %c0_20 = arith.constant 0 : index
    %20 = vector.load %arg5[%c0_19, %c0_20] : memref<128x384xf32, #tpu.memory_space<vmem>>, vector<128x384xf32>
    %cst_21 = arith.constant dense<0.000000e+00> : vector<8x384xf32>
    %21 = tpu.matmul %15, %20, %cst_21 {dimension_numbers = #tpu.dot_dimension_numbers<[1], [0], [0], [1], [0, 0, 1, 1], [], []>} : vector<8x128xf32>, vector<128x384xf32>, vector<8x384xf32> -> vector<8x384xf32>
    %22 = vector.extract_strided_slice %19 {offsets = [0, 0], sizes = [8, 128], strides = [1, 1]} : vector<8x384xf32> to vector<8x128xf32>
    %23 = vector.extract_strided_slice %21 {offsets = [0, 0], sizes = [8, 128], strides = [1, 1]} : vector<8x384xf32> to vector<8x128xf32>
    %24 = arith.addf %22, %23 : vector<8x128xf32>
    %25 = arith.negf %24 : vector<8x128xf32>
    %26 = math.exp %25 : vector<8x128xf32>
    %cst_22 = arith.constant 1.000000e+00 : f32
    %27 = vector.broadcast %cst_22 : f32 to vector<8x128xf32>
    %28 = arith.addf %27, %26 : vector<8x128xf32>
    %29 = arith.divf %27, %28 : vector<8x128xf32>
    %30 = vector.extract_strided_slice %19 {offsets = [0, 128], sizes = [8, 128], strides = [1, 1]} : vector<8x384xf32> to vector<8x128xf32>
    %31 = vector.extract_strided_slice %21 {offsets = [0, 128], sizes = [8, 128], strides = [1, 1]} : vector<8x384xf32> to vector<8x128xf32>
    %32 = arith.addf %30, %31 : vector<8x128xf32>
    %33 = arith.negf %32 : vector<8x128xf32>
    %34 = math.exp %33 : vector<8x128xf32>
    %cst_23 = arith.constant 1.000000e+00 : f32
    %35 = vector.broadcast %cst_23 : f32 to vector<8x128xf32>
    %36 = arith.addf %35, %34 : vector<8x128xf32>
    %37 = arith.divf %35, %36 : vector<8x128xf32>
    %38 = vector.extract_strided_slice %19 {offsets = [0, 256], sizes = [8, 128], strides = [1, 1]} : vector<8x384xf32> to vector<8x128xf32>
    %39 = vector.extract_strided_slice %21 {offsets = [0, 256], sizes = [8, 128], strides = [1, 1]} : vector<8x384xf32> to vector<8x128xf32>
    %40 = vector.broadcast %13 : vector<1x128xf32> to vector<8x128xf32>
    %41 = arith.addf %39, %40 : vector<8x128xf32>
    %42 = arith.mulf %29, %41 : vector<8x128xf32>
    %43 = arith.addf %38, %42 : vector<8x128xf32>
    %44 = math.tanh %43 : vector<8x128xf32>
    %45 = arith.subf %15, %44 : vector<8x128xf32>
    %46 = arith.mulf %37, %45 : vector<8x128xf32>
    %47 = arith.addf %44, %46 : vector<8x128xf32>
    %48 = arith.addi %14, %c0_i32_16 : i32
    %49 = vector.broadcast %48 : i32 to vector<8x1xi32>
    %50 = arith.cmpi sgt, %12, %49 : vector<8x1xi32>
    %51 = vector.shape_cast %50 : vector<8x1xi1> to vector<8x1xi1>
    %52 = vector.broadcast %51 : vector<8x1xi1> to vector<8x128xi1>
    %53 = arith.select %52, %47, %15 : vector<8x128xi1>, vector<8x128xf32>
    %c1_i32 = arith.constant 1 : i32
    %c8_i32_24 = arith.constant 8 : i32
    %54 = arith.muli %c1_i32, %c8_i32_24 : i32
    %55 = tpu.assume_multiple %54, 8 : i32
    %56 = arith.index_cast %55 : i32 to index
    %c0_25 = arith.constant 0 : index
    %57 = vector.load %arg11[%56, %c0_25] : memref<64x384xf32, #tpu.memory_space<vmem>>, vector<8x384xf32>
    %c0_26 = arith.constant 0 : index
    %c0_27 = arith.constant 0 : index
    %58 = vector.load %arg5[%c0_26, %c0_27] : memref<128x384xf32, #tpu.memory_space<vmem>>, vector<128x384xf32>
    %cst_28 = arith.constant dense<0.000000e+00> : vector<8x384xf32>
    %59 = tpu.matmul %53, %58, %cst_28 {dimension_numbers = #tpu.dot_dimension_numbers<[1], [0], [0], [1], [0, 0, 1, 1], [], []>} : vector<8x128xf32>, vector<128x384xf32>, vector<8x384xf32> -> vector<8x384xf32>
    %60 = vector.extract_strided_slice %57 {offsets = [0, 0], sizes = [8, 128], strides = [1, 1]} : vector<8x384xf32> to vector<8x128xf32>
    %61 = vector.extract_strided_slice %59 {offsets = [0, 0], sizes = [8, 128], strides = [1, 1]} : vector<8x384xf32> to vector<8x128xf32>
    %62 = arith.addf %60, %61 : vector<8x128xf32>
    %63 = arith.negf %62 : vector<8x128xf32>
    %64 = math.exp %63 : vector<8x128xf32>
    %cst_29 = arith.constant 1.000000e+00 : f32
    %65 = vector.broadcast %cst_29 : f32 to vector<8x128xf32>
    %66 = arith.addf %65, %64 : vector<8x128xf32>
    %67 = arith.divf %65, %66 : vector<8x128xf32>
    %68 = vector.extract_strided_slice %57 {offsets = [0, 128], sizes = [8, 128], strides = [1, 1]} : vector<8x384xf32> to vector<8x128xf32>
    %69 = vector.extract_strided_slice %59 {offsets = [0, 128], sizes = [8, 128], strides = [1, 1]} : vector<8x384xf32> to vector<8x128xf32>
    %70 = arith.addf %68, %69 : vector<8x128xf32>
    %71 = arith.negf %70 : vector<8x128xf32>
    %72 = math.exp %71 : vector<8x128xf32>
    %cst_30 = arith.constant 1.000000e+00 : f32
    %73 = vector.broadcast %cst_30 : f32 to vector<8x128xf32>
    %74 = arith.addf %73, %72 : vector<8x128xf32>
    %75 = arith.divf %73, %74 : vector<8x128xf32>
    %76 = vector.extract_strided_slice %57 {offsets = [0, 256], sizes = [8, 128], strides = [1, 1]} : vector<8x384xf32> to vector<8x128xf32>
    %77 = vector.extract_strided_slice %59 {offsets = [0, 256], sizes = [8, 128], strides = [1, 1]} : vector<8x384xf32> to vector<8x128xf32>
    %78 = vector.broadcast %13 : vector<1x128xf32> to vector<8x128xf32>
    %79 = arith.addf %77, %78 : vector<8x128xf32>
    %80 = arith.mulf %67, %79 : vector<8x128xf32>
    %81 = arith.addf %76, %80 : vector<8x128xf32>
    %82 = math.tanh %81 : vector<8x128xf32>
    %83 = arith.subf %53, %82 : vector<8x128xf32>
    %84 = arith.mulf %75, %83 : vector<8x128xf32>
    %85 = arith.addf %82, %84 : vector<8x128xf32>
    %86 = arith.addi %14, %c1_i32 : i32
    %87 = vector.broadcast %86 : i32 to vector<8x1xi32>
    %88 = arith.cmpi sgt, %12, %87 : vector<8x1xi32>
    %89 = vector.shape_cast %88 : vector<8x1xi1> to vector<8x1xi1>
    %90 = vector.broadcast %89 : vector<8x1xi1> to vector<8x128xi1>
    %91 = arith.select %90, %85, %53 : vector<8x128xi1>, vector<8x128xf32>
    %c2_i32 = arith.constant 2 : i32
    %c8_i32_31 = arith.constant 8 : i32
    %92 = arith.muli %c2_i32, %c8_i32_31 : i32
    %93 = tpu.assume_multiple %92, 8 : i32
    %94 = arith.index_cast %93 : i32 to index
    %c0_32 = arith.constant 0 : index
    %95 = vector.load %arg11[%94, %c0_32] : memref<64x384xf32, #tpu.memory_space<vmem>>, vector<8x384xf32>
    %c0_33 = arith.constant 0 : index
    %c0_34 = arith.constant 0 : index
    %96 = vector.load %arg5[%c0_33, %c0_34] : memref<128x384xf32, #tpu.memory_space<vmem>>, vector<128x384xf32>
    %cst_35 = arith.constant dense<0.000000e+00> : vector<8x384xf32>
    %97 = tpu.matmul %91, %96, %cst_35 {dimension_numbers = #tpu.dot_dimension_numbers<[1], [0], [0], [1], [0, 0, 1, 1], [], []>} : vector<8x128xf32>, vector<128x384xf32>, vector<8x384xf32> -> vector<8x384xf32>
    %98 = vector.extract_strided_slice %95 {offsets = [0, 0], sizes = [8, 128], strides = [1, 1]} : vector<8x384xf32> to vector<8x128xf32>
    %99 = vector.extract_strided_slice %97 {offsets = [0, 0], sizes = [8, 128], strides = [1, 1]} : vector<8x384xf32> to vector<8x128xf32>
    %100 = arith.addf %98, %99 : vector<8x128xf32>
    %101 = arith.negf %100 : vector<8x128xf32>
    %102 = math.exp %101 : vector<8x128xf32>
    %cst_36 = arith.constant 1.000000e+00 : f32
    %103 = vector.broadcast %cst_36 : f32 to vector<8x128xf32>
    %104 = arith.addf %103, %102 : vector<8x128xf32>
    %105 = arith.divf %103, %104 : vector<8x128xf32>
    %106 = vector.extract_strided_slice %95 {offsets = [0, 128], sizes = [8, 128], strides = [1, 1]} : vector<8x384xf32> to vector<8x128xf32>
    %107 = vector.extract_strided_slice %97 {offsets = [0, 128], sizes = [8, 128], strides = [1, 1]} : vector<8x384xf32> to vector<8x128xf32>
    %108 = arith.addf %106, %107 : vector<8x128xf32>
    %109 = arith.negf %108 : vector<8x128xf32>
    %110 = math.exp %109 : vector<8x128xf32>
    %cst_37 = arith.constant 1.000000e+00 : f32
    %111 = vector.broadcast %cst_37 : f32 to vector<8x128xf32>
    %112 = arith.addf %111, %110 : vector<8x128xf32>
    %113 = arith.divf %111, %112 : vector<8x128xf32>
    %114 = vector.extract_strided_slice %95 {offsets = [0, 256], sizes = [8, 128], strides = [1, 1]} : vector<8x384xf32> to vector<8x128xf32>
    %115 = vector.extract_strided_slice %97 {offsets = [0, 256], sizes = [8, 128], strides = [1, 1]} : vector<8x384xf32> to vector<8x128xf32>
    %116 = vector.broadcast %13 : vector<1x128xf32> to vector<8x128xf32>
    %117 = arith.addf %115, %116 : vector<8x128xf32>
    %118 = arith.mulf %105, %117 : vector<8x128xf32>
    %119 = arith.addf %114, %118 : vector<8x128xf32>
    %120 = math.tanh %119 : vector<8x128xf32>
    %121 = arith.subf %91, %120 : vector<8x128xf32>
    %122 = arith.mulf %113, %121 : vector<8x128xf32>
    %123 = arith.addf %120, %122 : vector<8x128xf32>
    %124 = arith.addi %14, %c2_i32 : i32
    %125 = vector.broadcast %124 : i32 to vector<8x1xi32>
    %126 = arith.cmpi sgt, %12, %125 : vector<8x1xi32>
    %127 = vector.shape_cast %126 : vector<8x1xi1> to vector<8x1xi1>
    %128 = vector.broadcast %127 : vector<8x1xi1> to vector<8x128xi1>
    %129 = arith.select %128, %123, %91 : vector<8x128xi1>, vector<8x128xf32>
    %c3_i32 = arith.constant 3 : i32
    %c8_i32_38 = arith.constant 8 : i32
    %130 = arith.muli %c3_i32, %c8_i32_38 : i32
    %131 = tpu.assume_multiple %130, 8 : i32
    %132 = arith.index_cast %131 : i32 to index
    %c0_39 = arith.constant 0 : index
    %133 = vector.load %arg11[%132, %c0_39] : memref<64x384xf32, #tpu.memory_space<vmem>>, vector<8x384xf32>
    %c0_40 = arith.constant 0 : index
    %c0_41 = arith.constant 0 : index
    %134 = vector.load %arg5[%c0_40, %c0_41] : memref<128x384xf32, #tpu.memory_space<vmem>>, vector<128x384xf32>
    %cst_42 = arith.constant dense<0.000000e+00> : vector<8x384xf32>
    %135 = tpu.matmul %129, %134, %cst_42 {dimension_numbers = #tpu.dot_dimension_numbers<[1], [0], [0], [1], [0, 0, 1, 1], [], []>} : vector<8x128xf32>, vector<128x384xf32>, vector<8x384xf32> -> vector<8x384xf32>
    %136 = vector.extract_strided_slice %133 {offsets = [0, 0], sizes = [8, 128], strides = [1, 1]} : vector<8x384xf32> to vector<8x128xf32>
    %137 = vector.extract_strided_slice %135 {offsets = [0, 0], sizes = [8, 128], strides = [1, 1]} : vector<8x384xf32> to vector<8x128xf32>
    %138 = arith.addf %136, %137 : vector<8x128xf32>
    %139 = arith.negf %138 : vector<8x128xf32>
    %140 = math.exp %139 : vector<8x128xf32>
    %cst_43 = arith.constant 1.000000e+00 : f32
    %141 = vector.broadcast %cst_43 : f32 to vector<8x128xf32>
    %142 = arith.addf %141, %140 : vector<8x128xf32>
    %143 = arith.divf %141, %142 : vector<8x128xf32>
    %144 = vector.extract_strided_slice %133 {offsets = [0, 128], sizes = [8, 128], strides = [1, 1]} : vector<8x384xf32> to vector<8x128xf32>
    %145 = vector.extract_strided_slice %135 {offsets = [0, 128], sizes = [8, 128], strides = [1, 1]} : vector<8x384xf32> to vector<8x128xf32>
    %146 = arith.addf %144, %145 : vector<8x128xf32>
    %147 = arith.negf %146 : vector<8x128xf32>
    %148 = math.exp %147 : vector<8x128xf32>
    %cst_44 = arith.constant 1.000000e+00 : f32
    %149 = vector.broadcast %cst_44 : f32 to vector<8x128xf32>
    %150 = arith.addf %149, %148 : vector<8x128xf32>
    %151 = arith.divf %149, %150 : vector<8x128xf32>
    %152 = vector.extract_strided_slice %133 {offsets = [0, 256], sizes = [8, 128], strides = [1, 1]} : vector<8x384xf32> to vector<8x128xf32>
    %153 = vector.extract_strided_slice %135 {offsets = [0, 256], sizes = [8, 128], strides = [1, 1]} : vector<8x384xf32> to vector<8x128xf32>
    %154 = vector.broadcast %13 : vector<1x128xf32> to vector<8x128xf32>
    %155 = arith.addf %153, %154 : vector<8x128xf32>
    %156 = arith.mulf %143, %155 : vector<8x128xf32>
    %157 = arith.addf %152, %156 : vector<8x128xf32>
    %158 = math.tanh %157 : vector<8x128xf32>
    %159 = arith.subf %129, %158 : vector<8x128xf32>
    %160 = arith.mulf %151, %159 : vector<8x128xf32>
    %161 = arith.addf %158, %160 : vector<8x128xf32>
    %162 = arith.addi %14, %c3_i32 : i32
    %163 = vector.broadcast %162 : i32 to vector<8x1xi32>
    %164 = arith.cmpi sgt, %12, %163 : vector<8x1xi32>
    %165 = vector.shape_cast %164 : vector<8x1xi1> to vector<8x1xi1>
    %166 = vector.broadcast %165 : vector<8x1xi1> to vector<8x128xi1>
    %167 = arith.select %166, %161, %129 : vector<8x128xi1>, vector<8x128xf32>
    %c4_i32 = arith.constant 4 : i32
    %c8_i32_45 = arith.constant 8 : i32
    %168 = arith.muli %c4_i32, %c8_i32_45 : i32
    %169 = tpu.assume_multiple %168, 8 : i32
    %170 = arith.index_cast %169 : i32 to index
    %c0_46 = arith.constant 0 : index
    %171 = vector.load %arg11[%170, %c0_46] : memref<64x384xf32, #tpu.memory_space<vmem>>, vector<8x384xf32>
    %c0_47 = arith.constant 0 : index
    %c0_48 = arith.constant 0 : index
    %172 = vector.load %arg5[%c0_47, %c0_48] : memref<128x384xf32, #tpu.memory_space<vmem>>, vector<128x384xf32>
    %cst_49 = arith.constant dense<0.000000e+00> : vector<8x384xf32>
    %173 = tpu.matmul %167, %172, %cst_49 {dimension_numbers = #tpu.dot_dimension_numbers<[1], [0], [0], [1], [0, 0, 1, 1], [], []>} : vector<8x128xf32>, vector<128x384xf32>, vector<8x384xf32> -> vector<8x384xf32>
    %174 = vector.extract_strided_slice %171 {offsets = [0, 0], sizes = [8, 128], strides = [1, 1]} : vector<8x384xf32> to vector<8x128xf32>
    %175 = vector.extract_strided_slice %173 {offsets = [0, 0], sizes = [8, 128], strides = [1, 1]} : vector<8x384xf32> to vector<8x128xf32>
    %176 = arith.addf %174, %175 : vector<8x128xf32>
    %177 = arith.negf %176 : vector<8x128xf32>
    %178 = math.exp %177 : vector<8x128xf32>
    %cst_50 = arith.constant 1.000000e+00 : f32
    %179 = vector.broadcast %cst_50 : f32 to vector<8x128xf32>
    %180 = arith.addf %179, %178 : vector<8x128xf32>
    %181 = arith.divf %179, %180 : vector<8x128xf32>
    %182 = vector.extract_strided_slice %171 {offsets = [0, 128], sizes = [8, 128], strides = [1, 1]} : vector<8x384xf32> to vector<8x128xf32>
    %183 = vector.extract_strided_slice %173 {offsets = [0, 128], sizes = [8, 128], strides = [1, 1]} : vector<8x384xf32> to vector<8x128xf32>
    %184 = arith.addf %182, %183 : vector<8x128xf32>
    %185 = arith.negf %184 : vector<8x128xf32>
    %186 = math.exp %185 : vector<8x128xf32>
    %cst_51 = arith.constant 1.000000e+00 : f32
    %187 = vector.broadcast %cst_51 : f32 to vector<8x128xf32>
    %188 = arith.addf %187, %186 : vector<8x128xf32>
    %189 = arith.divf %187, %188 : vector<8x128xf32>
    %190 = vector.extract_strided_slice %171 {offsets = [0, 256], sizes = [8, 128], strides = [1, 1]} : vector<8x384xf32> to vector<8x128xf32>
    %191 = vector.extract_strided_slice %173 {offsets = [0, 256], sizes = [8, 128], strides = [1, 1]} : vector<8x384xf32> to vector<8x128xf32>
    %192 = vector.broadcast %13 : vector<1x128xf32> to vector<8x128xf32>
    %193 = arith.addf %191, %192 : vector<8x128xf32>
    %194 = arith.mulf %181, %193 : vector<8x128xf32>
    %195 = arith.addf %190, %194 : vector<8x128xf32>
    %196 = math.tanh %195 : vector<8x128xf32>
    %197 = arith.subf %167, %196 : vector<8x128xf32>
    %198 = arith.mulf %189, %197 : vector<8x128xf32>
    %199 = arith.addf %196, %198 : vector<8x128xf32>
    %200 = arith.addi %14, %c4_i32 : i32
    %201 = vector.broadcast %200 : i32 to vector<8x1xi32>
    %202 = arith.cmpi sgt, %12, %201 : vector<8x1xi32>
    %203 = vector.shape_cast %202 : vector<8x1xi1> to vector<8x1xi1>
    %204 = vector.broadcast %203 : vector<8x1xi1> to vector<8x128xi1>
    %205 = arith.select %204, %199, %167 : vector<8x128xi1>, vector<8x128xf32>
    %c5_i32 = arith.constant 5 : i32
    %c8_i32_52 = arith.constant 8 : i32
    %206 = arith.muli %c5_i32, %c8_i32_52 : i32
    %207 = tpu.assume_multiple %206, 8 : i32
    %208 = arith.index_cast %207 : i32 to index
    %c0_53 = arith.constant 0 : index
    %209 = vector.load %arg11[%208, %c0_53] : memref<64x384xf32, #tpu.memory_space<vmem>>, vector<8x384xf32>
    %c0_54 = arith.constant 0 : index
    %c0_55 = arith.constant 0 : index
    %210 = vector.load %arg5[%c0_54, %c0_55] : memref<128x384xf32, #tpu.memory_space<vmem>>, vector<128x384xf32>
    %cst_56 = arith.constant dense<0.000000e+00> : vector<8x384xf32>
    %211 = tpu.matmul %205, %210, %cst_56 {dimension_numbers = #tpu.dot_dimension_numbers<[1], [0], [0], [1], [0, 0, 1, 1], [], []>} : vector<8x128xf32>, vector<128x384xf32>, vector<8x384xf32> -> vector<8x384xf32>
    %212 = vector.extract_strided_slice %209 {offsets = [0, 0], sizes = [8, 128], strides = [1, 1]} : vector<8x384xf32> to vector<8x128xf32>
    %213 = vector.extract_strided_slice %211 {offsets = [0, 0], sizes = [8, 128], strides = [1, 1]} : vector<8x384xf32> to vector<8x128xf32>
    %214 = arith.addf %212, %213 : vector<8x128xf32>
    %215 = arith.negf %214 : vector<8x128xf32>
    %216 = math.exp %215 : vector<8x128xf32>
    %cst_57 = arith.constant 1.000000e+00 : f32
    %217 = vector.broadcast %cst_57 : f32 to vector<8x128xf32>
    %218 = arith.addf %217, %216 : vector<8x128xf32>
    %219 = arith.divf %217, %218 : vector<8x128xf32>
    %220 = vector.extract_strided_slice %209 {offsets = [0, 128], sizes = [8, 128], strides = [1, 1]} : vector<8x384xf32> to vector<8x128xf32>
    %221 = vector.extract_strided_slice %211 {offsets = [0, 128], sizes = [8, 128], strides = [1, 1]} : vector<8x384xf32> to vector<8x128xf32>
    %222 = arith.addf %220, %221 : vector<8x128xf32>
    %223 = arith.negf %222 : vector<8x128xf32>
    %224 = math.exp %223 : vector<8x128xf32>
    %cst_58 = arith.constant 1.000000e+00 : f32
    %225 = vector.broadcast %cst_58 : f32 to vector<8x128xf32>
    %226 = arith.addf %225, %224 : vector<8x128xf32>
    %227 = arith.divf %225, %226 : vector<8x128xf32>
    %228 = vector.extract_strided_slice %209 {offsets = [0, 256], sizes = [8, 128], strides = [1, 1]} : vector<8x384xf32> to vector<8x128xf32>
    %229 = vector.extract_strided_slice %211 {offsets = [0, 256], sizes = [8, 128], strides = [1, 1]} : vector<8x384xf32> to vector<8x128xf32>
    %230 = vector.broadcast %13 : vector<1x128xf32> to vector<8x128xf32>
    %231 = arith.addf %229, %230 : vector<8x128xf32>
    %232 = arith.mulf %219, %231 : vector<8x128xf32>
    %233 = arith.addf %228, %232 : vector<8x128xf32>
    %234 = math.tanh %233 : vector<8x128xf32>
    %235 = arith.subf %205, %234 : vector<8x128xf32>
    %236 = arith.mulf %227, %235 : vector<8x128xf32>
    %237 = arith.addf %234, %236 : vector<8x128xf32>
    %238 = arith.addi %14, %c5_i32 : i32
    %239 = vector.broadcast %238 : i32 to vector<8x1xi32>
    %240 = arith.cmpi sgt, %12, %239 : vector<8x1xi32>
    %241 = vector.shape_cast %240 : vector<8x1xi1> to vector<8x1xi1>
    %242 = vector.broadcast %241 : vector<8x1xi1> to vector<8x128xi1>
    %243 = arith.select %242, %237, %205 : vector<8x128xi1>, vector<8x128xf32>
    %c6_i32 = arith.constant 6 : i32
    %c8_i32_59 = arith.constant 8 : i32
    %244 = arith.muli %c6_i32, %c8_i32_59 : i32
    %245 = tpu.assume_multiple %244, 8 : i32
    %246 = arith.index_cast %245 : i32 to index
    %c0_60 = arith.constant 0 : index
    %247 = vector.load %arg11[%246, %c0_60] : memref<64x384xf32, #tpu.memory_space<vmem>>, vector<8x384xf32>
    %c0_61 = arith.constant 0 : index
    %c0_62 = arith.constant 0 : index
    %248 = vector.load %arg5[%c0_61, %c0_62] : memref<128x384xf32, #tpu.memory_space<vmem>>, vector<128x384xf32>
    %cst_63 = arith.constant dense<0.000000e+00> : vector<8x384xf32>
    %249 = tpu.matmul %243, %248, %cst_63 {dimension_numbers = #tpu.dot_dimension_numbers<[1], [0], [0], [1], [0, 0, 1, 1], [], []>} : vector<8x128xf32>, vector<128x384xf32>, vector<8x384xf32> -> vector<8x384xf32>
    %250 = vector.extract_strided_slice %247 {offsets = [0, 0], sizes = [8, 128], strides = [1, 1]} : vector<8x384xf32> to vector<8x128xf32>
    %251 = vector.extract_strided_slice %249 {offsets = [0, 0], sizes = [8, 128], strides = [1, 1]} : vector<8x384xf32> to vector<8x128xf32>
    %252 = arith.addf %250, %251 : vector<8x128xf32>
    %253 = arith.negf %252 : vector<8x128xf32>
    %254 = math.exp %253 : vector<8x128xf32>
    %cst_64 = arith.constant 1.000000e+00 : f32
    %255 = vector.broadcast %cst_64 : f32 to vector<8x128xf32>
    %256 = arith.addf %255, %254 : vector<8x128xf32>
    %257 = arith.divf %255, %256 : vector<8x128xf32>
    %258 = vector.extract_strided_slice %247 {offsets = [0, 128], sizes = [8, 128], strides = [1, 1]} : vector<8x384xf32> to vector<8x128xf32>
    %259 = vector.extract_strided_slice %249 {offsets = [0, 128], sizes = [8, 128], strides = [1, 1]} : vector<8x384xf32> to vector<8x128xf32>
    %260 = arith.addf %258, %259 : vector<8x128xf32>
    %261 = arith.negf %260 : vector<8x128xf32>
    %262 = math.exp %261 : vector<8x128xf32>
    %cst_65 = arith.constant 1.000000e+00 : f32
    %263 = vector.broadcast %cst_65 : f32 to vector<8x128xf32>
    %264 = arith.addf %263, %262 : vector<8x128xf32>
    %265 = arith.divf %263, %264 : vector<8x128xf32>
    %266 = vector.extract_strided_slice %247 {offsets = [0, 256], sizes = [8, 128], strides = [1, 1]} : vector<8x384xf32> to vector<8x128xf32>
    %267 = vector.extract_strided_slice %249 {offsets = [0, 256], sizes = [8, 128], strides = [1, 1]} : vector<8x384xf32> to vector<8x128xf32>
    %268 = vector.broadcast %13 : vector<1x128xf32> to vector<8x128xf32>
    %269 = arith.addf %267, %268 : vector<8x128xf32>
    %270 = arith.mulf %257, %269 : vector<8x128xf32>
    %271 = arith.addf %266, %270 : vector<8x128xf32>
    %272 = math.tanh %271 : vector<8x128xf32>
    %273 = arith.subf %243, %272 : vector<8x128xf32>
    %274 = arith.mulf %265, %273 : vector<8x128xf32>
    %275 = arith.addf %272, %274 : vector<8x128xf32>
    %276 = arith.addi %14, %c6_i32 : i32
    %277 = vector.broadcast %276 : i32 to vector<8x1xi32>
    %278 = arith.cmpi sgt, %12, %277 : vector<8x1xi32>
    %279 = vector.shape_cast %278 : vector<8x1xi1> to vector<8x1xi1>
    %280 = vector.broadcast %279 : vector<8x1xi1> to vector<8x128xi1>
    %281 = arith.select %280, %275, %243 : vector<8x128xi1>, vector<8x128xf32>
    %c7_i32 = arith.constant 7 : i32
    %c8_i32_66 = arith.constant 8 : i32
    %282 = arith.muli %c7_i32, %c8_i32_66 : i32
    %283 = tpu.assume_multiple %282, 8 : i32
    %284 = arith.index_cast %283 : i32 to index
    %c0_67 = arith.constant 0 : index
    %285 = vector.load %arg11[%284, %c0_67] : memref<64x384xf32, #tpu.memory_space<vmem>>, vector<8x384xf32>
    %c0_68 = arith.constant 0 : index
    %c0_69 = arith.constant 0 : index
    %286 = vector.load %arg5[%c0_68, %c0_69] : memref<128x384xf32, #tpu.memory_space<vmem>>, vector<128x384xf32>
    %cst_70 = arith.constant dense<0.000000e+00> : vector<8x384xf32>
    %287 = tpu.matmul %281, %286, %cst_70 {dimension_numbers = #tpu.dot_dimension_numbers<[1], [0], [0], [1], [0, 0, 1, 1], [], []>} : vector<8x128xf32>, vector<128x384xf32>, vector<8x384xf32> -> vector<8x384xf32>
    %288 = vector.extract_strided_slice %285 {offsets = [0, 0], sizes = [8, 128], strides = [1, 1]} : vector<8x384xf32> to vector<8x128xf32>
    %289 = vector.extract_strided_slice %287 {offsets = [0, 0], sizes = [8, 128], strides = [1, 1]} : vector<8x384xf32> to vector<8x128xf32>
    %290 = arith.addf %288, %289 : vector<8x128xf32>
    %291 = arith.negf %290 : vector<8x128xf32>
    %292 = math.exp %291 : vector<8x128xf32>
    %cst_71 = arith.constant 1.000000e+00 : f32
    %293 = vector.broadcast %cst_71 : f32 to vector<8x128xf32>
    %294 = arith.addf %293, %292 : vector<8x128xf32>
    %295 = arith.divf %293, %294 : vector<8x128xf32>
    %296 = vector.extract_strided_slice %285 {offsets = [0, 128], sizes = [8, 128], strides = [1, 1]} : vector<8x384xf32> to vector<8x128xf32>
    %297 = vector.extract_strided_slice %287 {offsets = [0, 128], sizes = [8, 128], strides = [1, 1]} : vector<8x384xf32> to vector<8x128xf32>
    %298 = arith.addf %296, %297 : vector<8x128xf32>
    %299 = arith.negf %298 : vector<8x128xf32>
    %300 = math.exp %299 : vector<8x128xf32>
    %cst_72 = arith.constant 1.000000e+00 : f32
    %301 = vector.broadcast %cst_72 : f32 to vector<8x128xf32>
    %302 = arith.addf %301, %300 : vector<8x128xf32>
    %303 = arith.divf %301, %302 : vector<8x128xf32>
    %304 = vector.extract_strided_slice %285 {offsets = [0, 256], sizes = [8, 128], strides = [1, 1]} : vector<8x384xf32> to vector<8x128xf32>
    %305 = vector.extract_strided_slice %287 {offsets = [0, 256], sizes = [8, 128], strides = [1, 1]} : vector<8x384xf32> to vector<8x128xf32>
    %306 = vector.broadcast %13 : vector<1x128xf32> to vector<8x128xf32>
    %307 = arith.addf %305, %306 : vector<8x128xf32>
    %308 = arith.mulf %295, %307 : vector<8x128xf32>
    %309 = arith.addf %304, %308 : vector<8x128xf32>
    %310 = math.tanh %309 : vector<8x128xf32>
    %311 = arith.subf %281, %310 : vector<8x128xf32>
    %312 = arith.mulf %303, %311 : vector<8x128xf32>
    %313 = arith.addf %310, %312 : vector<8x128xf32>
    %314 = arith.addi %14, %c7_i32 : i32
    %315 = vector.broadcast %314 : i32 to vector<8x1xi32>
    %316 = arith.cmpi sgt, %12, %315 : vector<8x1xi32>
    %317 = vector.shape_cast %316 : vector<8x1xi1> to vector<8x1xi1>
    %318 = vector.broadcast %317 : vector<8x1xi1> to vector<8x128xi1>
    %319 = arith.select %318, %313, %281 : vector<8x128xi1>, vector<8x128xf32>
    %c8_i32_73 = arith.constant 8 : i32
    %c0_74 = arith.constant 0 : index
    %c0_75 = arith.constant 0 : index
    %320 = vector.load %arg12[%c0_74, %c0_75] : memref<8x128xf32, #tpu.memory_space<vmem>>, vector<8x128xf32>
    tpu.vector_store %arg12[%c0_74, %c0_75], %319 {strides = array<i32>} : memref<8x128xf32, #tpu.memory_space<vmem>>, vector<8x128xf32>,
    %c0_i32_76 = arith.constant 0 : i32
    %321 = arith.cmpi eq, %arg1, %c0_i32_76 : i32
    %322 = arith.extui %321 : i1 to i32
    %c0_i32_77 = arith.constant 0 : i32
    %323 = arith.cmpi ne, %322, %c0_i32_77 : i32
    scf.if %323 {
      %c0_78 = arith.constant 0 : index
      %c0_79 = arith.constant 0 : index
      %324 = vector.load %arg12[%c0_78, %c0_79] : memref<8x128xf32, #tpu.memory_space<vmem>>, vector<8x128xf32>
      %c0_80 = arith.constant 0 : index
      %c0_81 = arith.constant 0 : index
      %325 = vector.load %arg8[%c0_80, %c0_81] : memref<128x128xf32, #tpu.memory_space<vmem>>, vector<128x128xf32>
      %cst_82 = arith.constant dense<0.000000e+00> : vector<8x128xf32>
      %326 = tpu.matmul %324, %325, %cst_82 {dimension_numbers = #tpu.dot_dimension_numbers<[1], [0], [0], [1], [0, 0, 1, 1], [], []>} : vector<8x128xf32>, vector<128x128xf32>, vector<8x128xf32> -> vector<8x128xf32>
      %c0_83 = arith.constant 0 : index
      %c0_84 = arith.constant 0 : index
      %327 = vector.load %arg9[%c0_83, %c0_84] : memref<1x128xf32, #tpu.memory_space<vmem>>, vector<1x128xf32>
      %328 = vector.broadcast %327 : vector<1x128xf32> to vector<8x128xf32>
      %329 = arith.addf %326, %328 : vector<8x128xf32>
      %c0_85 = arith.constant 0 : index
      %c0_86 = arith.constant 0 : index
      %c0_87 = arith.constant 0 : index
      %330 = vector.load %arg10[%c0_85, %c0_86, %c0_87] : memref<1x8x128xf32, #tpu.memory_space<vmem>>, vector<1x8x128xf32>
      %331 = vector.shape_cast %330 : vector<1x8x128xf32> to vector<8x128xf32>
      %332 = vector.shape_cast %329 : vector<8x128xf32> to vector<1x8x128xf32>
      tpu.vector_store %arg10[%c0_85, %c0_86, %c0_87], %332 {strides = array<i32>} : memref<1x8x128xf32, #tpu.memory_space<vmem>>, vector<1x8x128xf32>,
    } else {
    }
    return
  }
  func.func @transform_0(%arg0: i32, %arg1: i32) -> (i32, i32, i32) {
    %c0_i32 = arith.constant 0 : i32
    %c0_i32_0 = arith.constant 0 : i32
    return %arg0, %arg1, %c0_i32 : i32, i32, i32
  }
  func.func @transform_1(%arg0: i32, %arg1: i32) -> (i32, i32, i32) {
    %c0_i32 = arith.constant 0 : i32
    %c0_i32_0 = arith.constant 0 : i32
    %c0_i32_1 = arith.constant 0 : i32
    return %arg0, %c0_i32, %c0_i32_0 : i32, i32, i32
  }
  func.func @transform_2(%arg0: i32, %arg1: i32) -> (i32, i32) {
    %c0_i32 = arith.constant 0 : i32
    %c0_i32_0 = arith.constant 0 : i32
    %c0_i32_1 = arith.constant 0 : i32
    return %c0_i32, %c0_i32_0 : i32, i32
  }
  func.func @transform_3(%arg0: i32, %arg1: i32) -> (i32, i32) {
    %c0_i32 = arith.constant 0 : i32
    %c0_i32_0 = arith.constant 0 : i32
    %c0_i32_1 = arith.constant 0 : i32
    return %c0_i32, %c0_i32_0 : i32, i32
  }
  func.func @transform_4(%arg0: i32, %arg1: i32) -> (i32, i32) {
    %c0_i32 = arith.constant 0 : i32
    %c0_i32_0 = arith.constant 0 : i32
    %c0_i32_1 = arith.constant 0 : i32
    return %c0_i32, %c0_i32_0 : i32, i32
  }
  func.func @transform_5(%arg0: i32, %arg1: i32) -> (i32, i32) {
    %c0_i32 = arith.constant 0 : i32
    %c0_i32_0 = arith.constant 0 : i32
    %c0_i32_1 = arith.constant 0 : i32
    return %c0_i32, %c0_i32_0 : i32, i32
  }
  func.func @transform_6(%arg0: i32, %arg1: i32) -> (i32, i32) {
    %c0_i32 = arith.constant 0 : i32
    %c0_i32_0 = arith.constant 0 : i32
    %c0_i32_1 = arith.constant 0 : i32
    return %c0_i32, %c0_i32_0 : i32, i32
  }
  func.func @transform_7(%arg0: i32, %arg1: i32) -> (i32, i32) {
    %c0_i32 = arith.constant 0 : i32
    %c0_i32_0 = arith.constant 0 : i32
    %c0_i32_1 = arith.constant 0 : i32
    return %c0_i32, %c0_i32_0 : i32, i32
  }
  func.func @transform_8(%arg0: i32, %arg1: i32) -> (i32, i32, i32) {
    %c0_i32 = arith.constant 0 : i32
    %c0_i32_0 = arith.constant 0 : i32
    %c0_i32_1 = arith.constant 0 : i32
    return %arg0, %c0_i32, %c0_i32_0 : i32, i32, i32
  }
}

</mosaic_0001>

<bundles_post_ra>
// kernel: tpu_custom_call.1
= control target key start
LH: loop header
LB: loop body
LE: loop exit
PB: predicated region body
PF: predicated region fallthrough
CT: control target
= control target key end

     0   :  { %13 = vsyncpa [#allocation5], 0  ;;  %s3784_s0 = inlined_call_operand.vmem [shape: f32[1,64,16], index: 0, kind: input, shape index: {}]   ;;  %s3785_s1 = inlined_call_operand.vmem [shape: s32[1,8,1], index: 1, kind: input, shape index: {}]   ;;  %s3786_s2 = inlined_call_operand.vmem [shape: f32[16,384], index: 2, kind: input, shape index: {}]   ;;  %s3787_s3 = inlined_call_operand.hbm [shape: f32[128,384], index: 3, kind: input, shape index: {}]   ;;  %s3788_s4 = inlined_call_operand.vmem [shape: f32[1,384], index: 4, kind: input, shape index: {}]   ;;  %s3789_s5 = inlined_call_operand.vmem [shape: f32[1,128], index: 5, kind: input, shape index: {}]   ;;  %s3790_s6 = inlined_call_operand.hbm [shape: f32[128,128], index: 6, kind: input, shape index: {}]   ;;  %s3791_s7 = inlined_call_operand.vmem [shape: f32[1,128], index: 7, kind: input, shape index: {}]   ;;  %s3792_s8 = inlined_call_operand.hbm [shape: f32[1,8,128], index: 8, kind: output, shape index: {}]  }
   0x1   :  { %14 = vsyncpa [#allocation8], 0 }
   0x2   :  { %15 = vsyncpa [#allocation6], 0  ;;  %s3163_s27 = smov [#allocation4]   ;;  %s3091_s9 = scalar_lea.hbm %s3787_s3, 6144 }
   0x3   :  { %s27_s28 = sshll.u32 %s3163_s27, 4  ;;  %p3092_p0 = scmp.ne.s32.totalorder %s3787_s3, %s3091_s9  ;;  %s28_s28 = int_to_ptr.vmem [resolvable:$true] %s27_s28 }
   0x4   :  { %p3095_p1 = scmp.lt.u32.totalorder %s3091_s9, %s3787_s3 }
   0x6   :  { %p3097_p2 = pnand %p3095_p1, %p3092_p0 }
   0x8   :  { %3100 = shalt.err (!%p3097_p2)
}
   0x9   :  { %s3101_s14 = scalar_lea.vmem %s28_s28, 6144  ;;  %p3106_p4 = scmp.lt.s32.totalorder %s28_s28, %s28_s28 }
   0xa   :  { %p3102_p3 = scmp.ne.s32.totalorder %s28_s28, %s3101_s14  ;;  %p3107_p5 = scmp.lt.s32.totalorder %s3101_s14, %s3101_s14 }
   0xc   :  { %p3108_p6 = por %p3107_p5, %p3106_p4 }
   0xe   :  { %p3109_p7 = pnand %p3108_p6, %p3102_p3 }
  0x10   :  { %3112 = shalt.err (!%p3109_p7)
}
  0x11   :  { %s3164_s15 = smov 384   ;;  %s3165_s16 = smov 24  }
  0x12   :  { %33 = dma.hbm_to_vmem [thread:$0]  %s3787_s3, 6144, %s28_s28, [#allocation5], %s3164_s15, %s3164_s15, %s3165_s16  }
  0x13   :  { %s3166_s19 = smov [#allocation7]   ;;  %s3113_s23 = scalar_lea.hbm %s3790_s6, 2048 }
  0x14   :  { %s43_s20 = sshll.u32 %s3166_s19, 4  ;;  %p3114_p8 = scmp.ne.s32.totalorder %s3790_s6, %s3113_s23  ;;  %s44_s20 = int_to_ptr.vmem [resolvable:$true] %s43_s20 }
  0x15   :  { %p3117_p9 = scmp.lt.u32.totalorder %s3113_s23, %s3790_s6 }
  0x17   :  { %p3119_p10 = pnand %p3117_p9, %p3114_p8 }
  0x19   :  { %3122 = shalt.err (!%p3119_p10)
}
  0x1a   :  { %s3123_s29 = scalar_lea.vmem %s44_s20, 2048  ;;  %p3128_p12 = scmp.lt.s32.totalorder %s44_s20, %s44_s20 }
  0x1b   :  { %p3124_p11 = scmp.ne.s32.totalorder %s44_s20, %s3123_s29  ;;  %p3129_p13 = scmp.lt.s32.totalorder %s3123_s29, %s3123_s29 }
  0x1d   :  { %p3130_p0 = por %p3129_p13, %p3128_p12 }
  0x1f   :  { %p3131_p1 = pnand %p3130_p0, %p3124_p11 }
  0x21   :  { %3134 = shalt.err (!%p3131_p1)
}
  0x22   :  { %s3167_s3 = smov 128   ;;  %s3168_s28 = smov 8  }
  0x23   :  { %49 = dma.hbm_to_vmem [thread:$0]  %s3790_s6, 2048, %s44_s20, [#allocation8], %s3167_s3, %s3167_s3, %s3168_s28  }
  0x24   :  { %3157 = dma.done.wait [#allocation5], 6144  }
  0x25   :  { %3158 = vsyncadd [#allocation5], 4294961152 }
  0x26   :  { %3159 = dma.done.wait [#allocation8], 2048  }
  0x27   :  { %3160 = vsyncadd [#allocation8], 4294965248  ;;  %v3169_v0 = vmov 0.0   ;;  %v3170_v1 = vmov 0   ;;  %v72_v2 = vld [vmem:[%s3786_s2 + $0x8] sm:$0xff]  ;;  %v75_v3 = vld [vmem:[%s3786_s2 + $0x20] sm:$0xff] }
  0x28   :  { %183 = vmatprep.mubr.f32.mxu0 %v3169_v0  ;;  %3009 = vset.pattern.permute.xlu0 %v3170_v1  ;;  %v71_v4 = vld [vmem:[%s3786_s2] sm:$0xff]  ;;  %v2486_v5 = vpack.c.bf16 %v75_v3, %v72_v2  ;;  %v74_v6 = vld [vmem:[%s3786_s2 + $0x18] sm:$0xff]  ;;  %vm94_vm0 = vcmask 130048   ;;  %v372_v8 = vld [vmem:[#allocation4 + $0x8] sm:$0xff]  ;;  %v3171_v49 = vmov 0.0|0.0   ;;  %vm3172_vm5 = vmmov 0  }
  0x29   :  { %3010 = vset.pattern.permute.xlu1 %v3170_v1  ;;  %v63_v7 = vld [vmem:[%s3784_s0] sm:$0xff]  ;;  %v2488_v9 = vpack.c.bf16 %v74_v6, %v71_v4  ;;  %v374_v12 = vld [vmem:[#allocation4 + $0x18] sm:$0xff]  ;;  %v381_v15 = vld [vmem:[#allocation4 + $0x50] sm:$0xff]  ;;  %s3173_s16 = smov [#allocation9]  }
  0x2a   :  { %v375_v10 = vld [vmem:[#allocation4 + $0x20] sm:$0xff]  ;;  %2159 = vmatprep.mubr.msk.f32.mxu1 %vm94_vm0, %v63_v7  ;;  %2487 = vmatprep.subr.bf16.mxu0 %v2486_v5  ;;  %v378_v14 = vld [vmem:[#allocation4 + $0x38] sm:$0xff]  ;;  %v377_v18 = vld [vmem:[#allocation4 + $0x30] sm:$0xff]  ;;  %s1939_s17 = sshll.u32 %s3173_s16, 4  ;;  %s1940_s17 = int_to_ptr.vmem [resolvable:$true] %s1939_s17 }
  0x2b   :  { %v371_v11 = vld [vmem:[#allocation4] sm:$0xff]  ;;  %v3262_v13 = vpack.c.bf16 %v375_v10, %v372_v8  ;;  %2489 = vmatpush1.bf16.msra.mxu0 %v2488_v9  ;;  %v3267_v17 = vpack.c.bf16 %v381_v15, %v378_v14  ;;  %v380_v19 = vld [vmem:[#allocation4 + $0x48] sm:$0xff]  ;;  %v386_v26 = vld [vmem:[#allocation4 + $0x78] sm:$0xff]  ;;  %s3135_s18 = scalar_lea.vmem %s1940_s17, 128  ;;  %p3140_p3 = scmp.lt.s32.totalorder %s1940_s17, %s1940_s17 }
  0x2c   :  { %v3264_v16 = vpack.c.bf16 %v374_v12, %v371_v11  ;;  %v384_v20 = vld [vmem:[#allocation4 + $0x68] sm:$0xff]  ;;  %v387_v21 = vld [vmem:[#allocation4 + $0x80] sm:$0xff]  ;;  %v3275_v23 = vpack.c.bf16 %v380_v19, %v377_v18  ;;  %v390_v27 = vld [vmem:[#allocation4 + $0x98] sm:$0xff]  ;;  %p3136_p2 = scmp.ne.s32.totalorder %s1940_s17, %s3135_s18  ;;  %p3141_p4 = scmp.lt.s32.totalorder %s3135_s18, %s3135_s18 }
  0x2d   :  { %2495 = vmatprep.subr.bf16.mxu0 %v3262_v13  ;;  %v64_v22 = vld [vmem:[%s3784_s0 + $0x8] sm:$0xff]  ;;  %v3278_v24 = vpack.c.bf16 %v387_v21, %v384_v20  ;;  %v383_v25 = vld [vmem:[#allocation4 + $0x60] sm:$0xff]  ;;  %v393_v28 = vld [vmem:[#allocation4 + $0xb0] sm:$0xff] }
  0x2e   :  { %1956 = vmatmul.mubr.msk.f32.vlgmr.msra.gmra.mrb[0].mxu0 %vm94_vm0, %v63_v7  ;;  %v73_v29 = vld [vmem:[%s3786_s2 + $0x10] sm:$0xff]  ;;  %v76_v30 = vld [vmem:[%s3786_s2 + $0x28] sm:$0xff]  ;;  %v3292_v32 = vpack.c.bf16 %v386_v26, %v383_v25  ;;  %v3295_v34 = vpack.c.bf16 %v393_v28, %v390_v27  ;;  %v399_v39 = vld [vmem:[#allocation4 + $0xe0] sm:$0xff]  ;;  %p3142_p5 = por %p3141_p4, %p3140_p3 }
  0x2f   :  { %2497 = vmatpush1.bf16.msra.mxu0 %v3264_v16  ;;  %189 = vmatprep.mubr.f32.mxu0 %v3169_v0  ;;  %v65_v31 = vld [vmem:[%s3784_s0 + $0x10] sm:$0xff]  ;;  %v2490_v33 = vpack.c.bf16 %v76_v30, %v73_v29  ;;  %v392_v36 = vld [vmem:[#allocation4 + $0xa8] sm:$0xff]  ;;  %v66_v42 = vld [vmem:[%s3784_s0 + $0x18] sm:$0xff] }
  0x30   :  { %2499 = vmatprep.subr.bf16.mxu0 %v3267_v17  ;;  %v389_v35 = vld [vmem:[#allocation4 + $0x90] sm:$0xff]  ;;  %v396_v38 = vld [vmem:[#allocation4 + $0xc8] sm:$0xff]  ;;  %v379_v44 = vld [vmem:[#allocation4 + $0x40] sm:$0xff]  ;;  %p3143_p6 = pnand %p3142_p5, %p3136_p2 }
  0x31   :  { %v373_v37 = vld [vmem:[#allocation4 + $0x10] sm:$0xff]  ;;  %2491 = vmatprep.subr.bf16.mxu1 %v2490_v33  ;;  %v376_v40 = vld [vmem:[#allocation4 + $0x28] sm:$0xff]  ;;  %v3305_v43 = vpack.c.bf16 %v392_v36, %v389_v35  ;;  %v382_v45 = vld [vmem:[#allocation4 + $0x58] sm:$0xff]  ;;  %v3308_v46 = vpack.c.bf16 %v399_v39, %v396_v38 }
  0x32   :  { %1957 = vmatmul.mubr.msk.f32.gmra.mrb[2].mxu0 %vm94_vm0, %v64_v22  ;;  %2493 = vmatpush3.bf16.msra.mxu1 %v2490_v33  ;;  %v3298_v41 = vpack.c.bf16 %v376_v40, %v373_v37  ;;  %v395_v47 = vld [vmem:[#allocation4 + $0xc0] sm:$0xff]  ;;  %v398_v48 = vld [vmem:[#allocation4 + $0xd8] sm:$0xff]  ;;  %v405_v51 = vld [vmem:[#allocation4 + $0x110] sm:$0xff]  ;;  %v3317_v53 = vpack.c.bf16 %v382_v45, %v379_v44  ;;  %v79_v44 = vlaneseq }
  0x33   :  { %2501 = vmatpush1.bf16.msra.mxu0 %v3275_v23  ;;  %195 = vmatprep.mubr.f32.mxu0 %v3169_v0  ;;  %v402_v50 = vld [vmem:[#allocation4 + $0xf8] sm:$0xff]  ;;  %v67_v52 = vld [vmem:[%s3784_s0 + $0x20] sm:$0xff]  ;;  %v3321_v54 = vpack.c.bf16 %v398_v48, %v395_v47  ;;  %v385_v55 = vld [vmem:[#allocation4 + $0x70] sm:$0xff] }
  0x34   :  { %2503 = vmatprep.subr.bf16.mxu0 %v3278_v24  ;;  %2526 = vmatprep.subr.bf16.mxu1 %v3171_v49  ;;  %v388_v56 = vld [vmem:[#allocation4 + $0x88] sm:$0xff]  ;;  %v3326_v57 = vld [vmem:[%s3785_s1] sm:$0xff]  ;;  %v3329_v58 = vpack.c.bf16 %v405_v51, %v402_v50  ;;  %v401_v59 = vld [vmem:[#allocation4 + $0xf0] sm:$0xff]  ;;  %v80_v45 = vshrl.u32 %v79_v44, 7 }
  0x35   :  { %2160 = vmatmul.mubr.msk.f32.vlgmr.msra.gmra.mrb[0].mxu1 %vm94_vm0, %v64_v22  ;;  %v404_v60 = vld [vmem:[#allocation4 + $0x108] sm:$0xff]  ;;  %vm588_vm1 = vcmp.gt.s32.totalorder %v3326_v57, 0  ;;  %v411_v62 = vld [vmem:[#allocation4 + $0x140] sm:$0xff]  ;;  %v3336_v63 = vpack.c.bf16 %v388_v56, %v385_v55  ;;  %v394_v6 = vld [vmem:[#allocation4 + $0xb8] sm:$0xff]  ;;  %vm765_vm2 = vcmp.gt.s32.totalorder %v3326_v57, 1  ;;  %vm1296_vm3 = vcmp.gt.s32.totalorder %v3326_v57, 4 }
  0x36   :  { %1958 = vmatmul.mubr.msk.f32.gmra.mrb[4].mxu0 %vm94_vm0, %v65_v31  ;;  %2528 = vmatpush3.bf16.msra.mxu1 %v3298_v41  ;;  %v408_v61 = vld [vmem:[#allocation4 + $0x128] sm:$0xff]  ;;  %v589_v2 = vsel %vm588_vm1, 1, %v3170_v1  ;;  %v3344_v4 = vpack.c.bf16 %v404_v60, %v401_v59  ;;  %v391_v5 = vld [vmem:[#allocation4 + $0xa0] sm:$0xff]  ;;  %v410_v9 = vld [vmem:[#allocation4 + $0x138] sm:$0xff]  ;;  %v766_v14 = vsel %vm765_vm2, 1, %v3170_v1  ;;  %v1297_v27 = vsel %vm1296_vm3, 1, %v3170_v1 }
  0x37   :  { %2505 = vmatpush1.bf16.msra.mxu0 %v3292_v32  ;;  %201 = vmatprep.mubr.f32.mxu0 %v3169_v0  ;;  %v68_v3 = vld [vmem:[%s3784_s0 + $0x28] sm:$0xff]  ;;  %v3348_v7 = vpack.c.bf16 %v411_v62, %v408_v61  ;;  %v407_v8 = vld [vmem:[#allocation4 + $0x120] sm:$0xff]  ;;  %v414_v10 = vld [vmem:[#allocation4 + $0x158] sm:$0xff]  ;;  %v3354_v12 = vpack.c.bf16 %v394_v6, %v391_v5  ;;  %vm1650_vm4 = vcmp.gt.s32.totalorder %v3326_v57, 6  ;;  %v89_v47 = vsub.s32 2, %v80_v45 }
  0x38   :  { %2507 = vmatprep.subr.bf16.mxu0 %v3295_v34  ;;  %2529 = vmatprep.subr.bf16.mxu1 %v3171_v49  ;;  %v417_v11 = vld [vmem:[#allocation4 + $0x170] sm:$0xff]  ;;  %v3362_v18 = vpack.c.bf16 %v410_v9, %v407_v8  ;;  %v400_v20 = vld [vmem:[#allocation4 + $0xe8] sm:$0xff]  ;;  %v70_v28 = vld [vmem:[%s3784_s0 + $0x38] sm:$0xff]  ;;  %v1651_v35 = vsel %vm1650_vm4, 1, %v3170_v1  ;;  %v81_v62 = vsub.s32 0, %v80_v45  ;;  %vm942_vm7 = vcmp.gt.s32.totalorder %v3326_v57, 2 }
  0x39   :  { %2162 = vmatprep.mubr.msk.f32.mxu1 %vm94_vm0, %v65_v31  ;;  %591 = vperm.xlu0 %3009, %v589_v2   ;;  %v69_v15 = vld [vmem:[%s3784_s0 + $0x30] sm:$0xff]  ;;  %v3366_v21 = vpack.c.bf16 %v417_v11, %v414_v10  ;;  %v416_v25 = vld [vmem:[#allocation4 + $0x168] sm:$0xff]  ;;  %v403_v30 = vld [vmem:[#allocation4 + $0x100] sm:$0xff]  ;;  %vm1119_vm8 = vcmp.gt.s32.totalorder %v3326_v57, 3  ;;  %vm1473_vm9 = vcmp.gt.s32.totalorder %v3326_v57, 5  ;;  %vm1827_vm10 = vcmp.gt.s32.totalorder %v3326_v57, 7 }
  0x3a   :  { %1959 = vmatmul.mubr.msk.f32.gmra.mrb[6].mxu0 %vm94_vm0, %v66_v42  ;;  %2531 = vmatpush3.bf16.msra.mxu1 %v3317_v53  ;;  %v397_v19 = vld [vmem:[#allocation4 + $0xd0] sm:$0xff]  ;;  %v406_v31 = vld [vmem:[#allocation4 + $0x118] sm:$0xff]  ;;  %v412_v37 = vld [vmem:[#allocation4 + $0x148] sm:$0xff] }
  0x3b   :  { %2509 = vmatpush1.bf16.msra.mxu0 %v3305_v43  ;;  %207 = vmatprep.mubr.f32.mxu0 %v3169_v0  ;;  %v413_v22 = vld [vmem:[#allocation4 + $0x150] sm:$0xff]  ;;  %v3372_v26 = vpack.c.bf16 %v400_v20, %v397_v19  ;;  %v3388_v33 = vpack.c.bf16 %v406_v31, %v403_v30  ;;  %v415_v39 = vld [vmem:[#allocation4 + $0x160] sm:$0xff]  ;;  %v418_v40 = vld [vmem:[#allocation4 + $0x178] sm:$0xff]  ;;  %v85_v19 = vsub.s32 1, %v80_v45 }
  0x3c   :  { %2511 = vmatprep.subr.bf16.mxu0 %v3308_v46  ;;  %2532 = vmatprep.subr.bf16.mxu1 %v3171_v49  ;;  %v3380_v29 = vpack.c.bf16 %v416_v25, %v413_v22  ;;  %v409_v36 = vld [vmem:[#allocation4 + $0x130] sm:$0xff]  ;;  %v77_v48 = vld [vmem:[%s3788_s4] sm:$0x7] }
  0x3d   :  { %2163 = vmatmul.mubr.msk.f32.gmra.mrb[2].mxu1 %vm94_vm0, %v66_v42  ;;  %768 = vperm.xlu0 %3009, %v766_v14   ;;  %v3398_v38 = vpack.c.bf16 %v412_v37, %v409_v36  ;;  %v3407_v42 = vpack.c.bf16 %v418_v40, %v415_v39  ;;  %v90_v50 = vrot.slane %v77_v48, %v89_v47  ;;  %v3472_v39 = vld [vmem:[%s3789_s5] ss:$0 sm:$0xff] }
  0x3e   :  { %1960 = vmatmul.mubr.msk.f32.gmra.mrb[8].mxu0 %vm94_vm0, %v67_v52  ;;  %2534 = vmatpush3.bf16.msra.mxu1 %v3336_v63  ;;  %v3457_v6 = vrot.slane %v77_v48, %v81_v62 }
  0x3f   :  { %2513 = vmatpush1.bf16.msra.mxu0 %v3321_v54  ;;  %213 = vmatprep.mubr.f32.mxu0 %v3169_v0 }
  0x40   :  { %2515 = vmatprep.subr.bf16.mxu0 %v3329_v58  ;;  %2535 = vmatprep.subr.bf16.mxu1 %v3171_v49 }
  0x41   :  { %2165 = vmatprep.mubr.msk.f32.mxu1 %vm94_vm0, %v67_v52  ;;  %1299 = vperm.xlu0 %3009, %v1297_v27   ;;  %v3466_v27 = vrot.slane %v77_v48, %v85_v19  ;;  %v1828_v19 = vsel %vm1827_vm10, 1, %v3170_v1 }
  0x42   :  { %1961 = vmatmul.mubr.msk.f32.gmra.mrb[10].mxu0 %vm94_vm0, %v68_v3  ;;  %2537 = vmatpush3.bf16.msra.mxu1 %v3354_v12 }
  0x43   :  { %2517 = vmatpush1.bf16.msra.mxu0 %v3344_v4  ;;  %219 = vmatprep.mubr.f32.mxu0 %v3169_v0 }
  0x44   :  { %2519 = vmatprep.subr.bf16.mxu0 %v3348_v7  ;;  %2538 = vmatprep.subr.bf16.mxu1 %v3171_v49 }
  0x45   :  { %2166 = vmatmul.mubr.msk.f32.gmra.mrb[4].mxu1 %vm94_vm0, %v68_v3  ;;  %1653 = vperm.xlu0 %3009, %v1651_v35  }
  0x46   :  { %1962 = vmatmul.mubr.msk.f32.gmra.mrb[12].mxu0 %vm94_vm0, %v69_v15  ;;  %2540 = vmatpush3.bf16.msra.mxu1 %v3372_v26 }
  0x47   :  { %2521 = vmatpush1.bf16.msra.mxu0 %v3362_v18  ;;  %225 = vmatprep.mubr.f32.mxu0 %v3169_v0 }
  0x48   :  { %2523 = vmatprep.subr.bf16.mxu0 %v3366_v21  ;;  %2541 = vmatprep.subr.bf16.mxu1 %v3171_v49 }
  0x49   :  { %2168 = vmatprep.mubr.msk.f32.mxu1 %vm94_vm0, %v69_v15 }
  0x4a   :  { %1963 = vmatmul.mubr.msk.f32.gmra.mrb[14].mxu0 %vm94_vm0, %v70_v28  ;;  %2169 = vmatmul.mubr.msk.f32.gmra.mrb[6].mxu1 %vm94_vm0, %v70_v28 }
  0x4b   :  { %2525 = vmatpush1.bf16.msra.mxu0 %v3380_v29  ;;  %483 = vmatprep.mubr.f32.mxu0 %v3169_v0 }
  0x4c   :  { %2543 = vmatpush3.bf16.msra.mxu1 %v3388_v33  ;;  %2203 = vmatprep.mubr.msk.f32.mxu1 %vm3172_vm5, %v3169_v0 }
  0x4d   :  { %2544 = vmatprep.subr.bf16.mxu1 %v3171_v49  ;;  %2551 = vmatprep.subr.bf16.mxu0 %v3262_v13 }
  0x4e   :  { %484 = vmatmul.mubr.f32.vlgmr.msra.gmra.mrb[0].mxu0 %v3169_v0 }
  0x4f   :  { %665 = vmatprep.mubr.f32.mxu0 %v3169_v0  ;;  %2553 = vmatpush1.bf16.msra.mxu0 %v3264_v16 }
  0x50   :  { %2546 = vmatpush3.bf16.msra.mxu1 %v3398_v38  ;;  %2555 = vmatprep.subr.bf16.mxu0 %v3267_v17 }
  0x51   :  { %2547 = vmatprep.subr.bf16.mxu1 %v3171_v49 }
  0x53   :  { %2557 = vmatpush1.bf16.msra.mxu0 %v3275_v23 }
  0x54   :  { %2549 = vmatpush3.bf16.msra.mxu1 %v3407_v42  ;;  %2559 = vmatprep.subr.bf16.mxu0 %v3278_v24 }
  0x55   :  { %2582 = vmatprep.subr.bf16.mxu1 %v3171_v49 }
  0x57   :  { %2204 = vmatmul.mubr.f32.vlgmr.msra.gmra.mrb[8].mxu1 %v3169_v0  ;;  %2561 = vmatpush1.bf16.msra.mxu0 %v3292_v32 }
  0x58   :  { %2584 = vmatpush3.bf16.msra.mxu1 %v3298_v41  ;;  %2563 = vmatprep.subr.bf16.mxu0 %v3295_v34 }
  0x59   :  { %2585 = vmatprep.subr.bf16.mxu1 %v3171_v49  ;;  %2238 = vmatprep.mubr.msk.f32.mxu1 %vm3172_vm5, %v3169_v0 }
  0x5b   :  { %2565 = vmatpush1.bf16.msra.mxu0 %v3305_v43 }
  0x5c   :  { %2587 = vmatpush3.bf16.msra.mxu1 %v3317_v53  ;;  %2567 = vmatprep.subr.bf16.mxu0 %v3308_v46 }
  0x5d   :  { %2588 = vmatprep.subr.bf16.mxu1 %v3171_v49 }
  0x5f   :  { %2569 = vmatpush1.bf16.msra.mxu0 %v3321_v54 }
  0x60   :  { %2590 = vmatpush3.bf16.msra.mxu1 %v3336_v63  ;;  %2571 = vmatprep.subr.bf16.mxu0 %v3329_v58 }
  0x61   :  { %2591 = vmatprep.subr.bf16.mxu1 %v3171_v49 }
  0x63   :  { %2573 = vmatpush1.bf16.msra.mxu0 %v3344_v4 }
  0x64   :  { %2593 = vmatpush3.bf16.msra.mxu1 %v3354_v12  ;;  %2575 = vmatprep.subr.bf16.mxu0 %v3348_v7 }
  0x65   :  { %2594 = vmatprep.subr.bf16.mxu1 %v3171_v49 }
  0x67   :  { %2577 = vmatpush1.bf16.msra.mxu0 %v3362_v18 }
  0x68   :  { %2596 = vmatpush3.bf16.msra.mxu1 %v3372_v26  ;;  %2579 = vmatprep.subr.bf16.mxu0 %v3366_v21 }
  0x69   :  { %2597 = vmatprep.subr.bf16.mxu1 %v3171_v49 }
  0x6b   :  { %2581 = vmatpush1.bf16.msra.mxu0 %v3380_v29 }
  0x6c   :  { %2599 = vmatpush3.bf16.msra.mxu1 %v3388_v33  ;;  %2607 = vmatprep.subr.bf16.mxu0 %v3262_v13 }
  0x6d   :  { %2600 = vmatprep.subr.bf16.mxu1 %v3171_v49 }
  0x70   :  { %2602 = vmatpush3.bf16.msra.mxu1 %v3398_v38 }
  0x71   :  { %2603 = vmatprep.subr.bf16.mxu1 %v3171_v49 }
  0x74   :  { %2605 = vmatpush3.bf16.msra.mxu1 %v3407_v42 }
  0x75   :  { %2638 = vmatprep.subr.bf16.mxu1 %v3171_v49 }
 0x108   :  { %v2161_v51 = vpop.f32.mrb[0].mxu1 }
 0x109   :  { %v3449_v52 = vadd.f32 %v2161_v51, %v90_v50  ;;  %v298_v55 = vpop.f32.mrb[1].mxu1 }
 0x10a   :  { %v299_v47 = vadd.f32 %v298_v55, %v90_v50  ;;  %v1120_v55 = vsel %vm1119_vm8, 1, %v3170_v1 }
 0x110   :  { %v2164_v56 = vpop.f32.mrb[2].mxu1 }
 0x111   :  { %v3451_v59 = vadd.f32 %v2164_v56, %v90_v50  ;;  %v308_v60 = vpop.f32.mrb[3].mxu1 }
 0x112   :  { %v3453_v61 = vadd.f32 %v308_v60, %v90_v50 }
 0x118   :  { %v2167_v2 = vpop.f32.mrb[4].mxu1 }
 0x119   :  { %v3455_v3 = vadd.f32 %v2167_v2, %v90_v50  ;;  %v318_v5 = vpop.f32.mrb[5].mxu1 }
 0x11a   :  { %v3459_v8 = vadd.f32 %v318_v5, %v90_v50  ;;  %v592_v5 = vpop.permute.xlu0 %591 }
 0x11b   :  { %vm593_vm6 = vcmp.eq.s32.totalorder %v592_v5, 1 }
 0x11d   :  { %v2170_v9 = vpop.f32.mrb[6].mxu1 }
 0x11e   :  { %v3461_v11 = vadd.f32 %v2170_v9, %v90_v50  ;;  %v328_v14 = vpop.f32.mrb[7].mxu1  ;;  %v769_v5 = vpop.permute.xlu0 %768 }
 0x11f   :  { %v3464_v22 = vadd.f32 %v328_v14, %v90_v50  ;;  %v943_v50 = vsel %vm942_vm7, 1, %v3170_v1  ;;  %vm770_vm11 = vcmp.eq.s32.totalorder %v769_v5, 1 }
 0x120   :  { %945 = vperm.xlu1 %3010, %v943_v50  }
 0x121   :  { %v485_v10 = vpop.f32.mrb[0].mxu0 }
 0x122   :  { %v2966_v15 = vadd.f32 %v485_v10, %v3457_v6  ;;  %v487_v20 = vpop.f32.mrb[1].mxu0 }
 0x123   :  { %v2967_v28 = vadd.f32 %v487_v20, %v3466_v27 }
 0x124   :  { %v1972_v25 = vmul.f32 -1.442695, %v2966_v15  ;;  %1122 = vperm.xlu1 %3010, %v1120_v55   ;;  %v1474_v15 = vsel %vm1473_vm9, 1, %v3170_v1 }
 0x125   :  { %v1973_v35 = vmul.f32 -1.442695, %v2967_v28 }
 0x126   :  { %3011 = vpow2.f32 %v1972_v25 }
 0x127   :  { %3013 = vpow2.f32 %v1973_v35 }
 0x128   :  { %1476 = vperm.xlu1 %3010, %v1474_v15  }
 0x12a   :  { %v556_v30 = vpop.f32.mrb[8].mxu1 }
 0x12b   :  { %v2205_v31 = vpop.f32.mrb[9].mxu1  ;;  %v580_v40 = vadd.f32 %v3472_v39, %v556_v30 }
 0x12c   :  { %1830 = vperm.xlu1 %3010, %v1828_v19  }
 0x130   :  { %v3012_v36 = vpop.eup %3011 }
 0x131   :  { %v564_v37 = vadd.f32 1.0, %v3012_v36  ;;  %v3014_v44 = vpop.eup %3013 }
 0x132   :  { %v571_v51 = vadd.f32 1.0, %v3014_v44 }
 0x133   :  { %3015 = vrcp.f32 %v564_v37 }
 0x13d   :  { %v3016_v45 = vpop.eup %3015 }
 0x13e   :  { %v581_v48 = vmul.f32 %v3016_v45, %v580_v40 }
 0x140   :  { %v582_v56 = vadd.f32 %v581_v48, %v299_v47 }
 0x142   :  { %3017 = vtanh.f32 %v582_v56 }
 0x143   :  { %3019 = vrcp.f32 %v571_v51 }
 0x14c   :  { %v3018_v60 = vpop.eup %3017 }
 0x14d   :  { %v584_v62 = vsub.f32 0.0, %v3018_v60  ;;  %v3020_v2 = vpop.eup %3019 }
 0x14f   :  { %v585_v9 = vmul.f32 %v3020_v2, %v584_v62 }
 0x151   :  { %v586_v10 = vadd.f32 %v3018_v60, %v585_v9 }
 0x153   :  { %v3475_v14 = vsel %vm593_vm6, %v586_v10, 0.0  ;;  %1990 = vmatmul.mubr.msk.f32.vlgmr.msra.gmra.mrb[2].mxu0 %vm593_vm6, %v586_v10  ;;  %2239 = vmatmul.mubr.msk.f32.vlgmr.msra.gmra.mrb[10].mxu1 %vm593_vm6, %v586_v10 }
 0x154   :  { %2609 = vmatpush1.bf16.msra.mxu0 %v3264_v16  ;;  %2640 = vmatpush3.bf16.msra.mxu1 %v3298_v41 }
 0x155   :  { %2611 = vmatprep.subr.bf16.mxu0 %v3267_v17  ;;  %2641 = vmatprep.subr.bf16.mxu1 %v3171_v49 }
 0x156   :  { %842 = vmatprep.mubr.f32.mxu0 %v3169_v0  ;;  %2273 = vmatprep.mubr.msk.f32.mxu1 %vm3172_vm5, %v3169_v0 }
 0x158   :  { %2613 = vmatpush1.bf16.msra.mxu0 %v3275_v23  ;;  %2643 = vmatpush3.bf16.msra.mxu1 %v3317_v53 }
 0x159   :  { %2615 = vmatprep.subr.bf16.mxu0 %v3278_v24  ;;  %2644 = vmatprep.subr.bf16.mxu1 %v3171_v49 }
 0x15c   :  { %2617 = vmatpush1.bf16.msra.mxu0 %v3292_v32  ;;  %2646 = vmatpush3.bf16.msra.mxu1 %v3336_v63 }
 0x15d   :  { %2619 = vmatprep.subr.bf16.mxu0 %v3295_v34  ;;  %2647 = vmatprep.subr.bf16.mxu1 %v3171_v49 }
 0x160   :  { %2621 = vmatpush1.bf16.msra.mxu0 %v3305_v43  ;;  %2649 = vmatpush3.bf16.msra.mxu1 %v3354_v12 }
 0x161   :  { %2623 = vmatprep.subr.bf16.mxu0 %v3308_v46  ;;  %2650 = vmatprep.subr.bf16.mxu1 %v3171_v49 }
 0x164   :  { %2625 = vmatpush1.bf16.msra.mxu0 %v3321_v54  ;;  %2652 = vmatpush3.bf16.msra.mxu1 %v3372_v26 }
 0x165   :  { %2627 = vmatprep.subr.bf16.mxu0 %v3329_v58  ;;  %2653 = vmatprep.subr.bf16.mxu1 %v3171_v49 }
 0x168   :  { %2629 = vmatpush1.bf16.msra.mxu0 %v3344_v4  ;;  %2655 = vmatpush3.bf16.msra.mxu1 %v3388_v33 }
 0x169   :  { %2631 = vmatprep.subr.bf16.mxu0 %v3348_v7  ;;  %2656 = vmatprep.subr.bf16.mxu1 %v3171_v49 }
 0x16c   :  { %2633 = vmatpush1.bf16.msra.mxu0 %v3362_v18  ;;  %2658 = vmatpush3.bf16.msra.mxu1 %v3398_v38 }
 0x16d   :  { %2635 = vmatprep.subr.bf16.mxu0 %v3366_v21  ;;  %2659 = vmatprep.subr.bf16.mxu1 %v3171_v49 }
 0x170   :  { %2637 = vmatpush1.bf16.msra.mxu0 %v3380_v29  ;;  %2661 = vmatpush3.bf16.msra.mxu1 %v3407_v42 }
 0x171   :  { %2663 = vmatprep.subr.bf16.mxu0 %v3262_v13  ;;  %2694 = vmatprep.subr.bf16.mxu1 %v3171_v49 }
 0x226   :  { %v667_v20 = vpop.f32.mrb[2].mxu0  ;;  %v738_v25 = vpop.f32.mrb[10].mxu1 }
 0x227   :  { %v2968_v28 = vadd.f32 %v667_v20, %v3457_v6  ;;  %v669_v30 = vpop.f32.mrb[3].mxu0  ;;  %v2240_v31 = vpop.f32.mrb[11].mxu1  ;;  %v756_v45 = vadd.f32 %v3472_v39, %v738_v25 }
 0x228   :  { %v2969_v36 = vadd.f32 %v669_v30, %v3466_v27 }
 0x229   :  { %v1975_v35 = vmul.f32 -1.442695, %v2968_v28 }
 0x22a   :  { %v1976_v37 = vmul.f32 -1.442695, %v2969_v36 }
 0x22b   :  { %3021 = vpow2.f32 %v1975_v35 }
 0x22c   :  { %3023 = vpow2.f32 %v1976_v37 }
 0x235   :  { %v3022_v40 = vpop.eup %3021 }
 0x236   :  { %v746_v44 = vadd.f32 1.0, %v3022_v40  ;;  %v3024_v57 = vpop.eup %3023 }
 0x237   :  { %v753_v51 = vadd.f32 1.0, %v3024_v57 }
 0x238   :  { %3025 = vrcp.f32 %v746_v44 }
 0x242   :  { %v3026_v1 = vpop.eup %3025 }
 0x243   :  { %v757_v47 = vmul.f32 %v3026_v1, %v756_v45 }
 0x245   :  { %v758_v48 = vadd.f32 %v757_v47, %v3449_v52  ;;  %v946_v47 = vpop.permute.xlu1 %945 }
 0x246   :  { %vm947_vm12 = vcmp.eq.s32.totalorder %v946_v47, 1 }
 0x247   :  { %3027 = vtanh.f32 %v758_v48 }
 0x248   :  { %3029 = vrcp.f32 %v753_v51 }
 0x251   :  { %v3028_v56 = vpop.eup %3027 }
 0x252   :  { %v760_v60 = vsub.f32 %v3475_v14, %v3028_v56  ;;  %v3030_v62 = vpop.eup %3029 }
 0x254   :  { %v761_v2 = vmul.f32 %v3030_v62, %v760_v60 }
 0x256   :  { %v762_v9 = vadd.f32 %v3028_v56, %v761_v2 }
 0x258   :  { %v3526_v10 = vsel %vm770_vm11, %v762_v9, %v3475_v14 }
 0x259   :  { %843 = vmatmul.mubr.f32.vlgmr.msra.gmra.mrb[4].mxu0 %v3526_v10  ;;  %2274 = vmatmul.mubr.f32.vlgmr.msra.gmra.mrb[12].mxu1 %v3526_v10 }
 0x25a   :  { %2665 = vmatpush1.bf16.msra.mxu0 %v3264_v16  ;;  %2696 = vmatpush3.bf16.msra.mxu1 %v3298_v41 }
 0x25b   :  { %2667 = vmatprep.subr.bf16.mxu0 %v3267_v17  ;;  %2697 = vmatprep.subr.bf16.mxu1 %v3171_v49 }
 0x25c   :  { %1019 = vmatprep.mubr.f32.mxu0 %v3169_v0  ;;  %2308 = vmatprep.mubr.msk.f32.mxu1 %vm3172_vm5, %v3169_v0 }
 0x25e   :  { %2669 = vmatpush1.bf16.msra.mxu0 %v3275_v23  ;;  %2699 = vmatpush3.bf16.msra.mxu1 %v3317_v53 }
 0x25f   :  { %2671 = vmatprep.subr.bf16.mxu0 %v3278_v24  ;;  %2700 = vmatprep.subr.bf16.mxu1 %v3171_v49 }
 0x262   :  { %2673 = vmatpush1.bf16.msra.mxu0 %v3292_v32  ;;  %2702 = vmatpush3.bf16.msra.mxu1 %v3336_v63 }
 0x263   :  { %2675 = vmatprep.subr.bf16.mxu0 %v3295_v34  ;;  %2703 = vmatprep.subr.bf16.mxu1 %v3171_v49 }
 0x266   :  { %2677 = vmatpush1.bf16.msra.mxu0 %v3305_v43  ;;  %2705 = vmatpush3.bf16.msra.mxu1 %v3354_v12 }
 0x267   :  { %2679 = vmatprep.subr.bf16.mxu0 %v3308_v46  ;;  %2706 = vmatprep.subr.bf16.mxu1 %v3171_v49 }
 0x26a   :  { %2681 = vmatpush1.bf16.msra.mxu0 %v3321_v54  ;;  %2708 = vmatpush3.bf16.msra.mxu1 %v3372_v26 }
 0x26b   :  { %2683 = vmatprep.subr.bf16.mxu0 %v3329_v58  ;;  %2709 = vmatprep.subr.bf16.mxu1 %v3171_v49 }
 0x26e   :  { %2685 = vmatpush1.bf16.msra.mxu0 %v3344_v4  ;;  %2711 = vmatpush3.bf16.msra.mxu1 %v3388_v33 }
 0x26f   :  { %2687 = vmatprep.subr.bf16.mxu0 %v3348_v7  ;;  %2712 = vmatprep.subr.bf16.mxu1 %v3171_v49 }
 0x272   :  { %2689 = vmatpush1.bf16.msra.mxu0 %v3362_v18  ;;  %2714 = vmatpush3.bf16.msra.mxu1 %v3398_v38 }
 0x273   :  { %2691 = vmatprep.subr.bf16.mxu0 %v3366_v21  ;;  %2715 = vmatprep.subr.bf16.mxu1 %v3171_v49 }
 0x276   :  { %2693 = vmatpush1.bf16.msra.mxu0 %v3380_v29  ;;  %2717 = vmatpush3.bf16.msra.mxu1 %v3407_v42 }
 0x277   :  { %2719 = vmatprep.subr.bf16.mxu0 %v3262_v13  ;;  %2750 = vmatprep.subr.bf16.mxu1 %v3171_v49 }
 0x32c   :  { %v844_v52 = vpop.f32.mrb[4].mxu0  ;;  %v915_v14 = vpop.f32.mrb[12].mxu1 }
 0x32d   :  { %v2970_v50 = vadd.f32 %v844_v52, %v3457_v6  ;;  %v846_v55 = vpop.f32.mrb[5].mxu0  ;;  %v2275_v15 = vpop.f32.mrb[13].mxu1  ;;  %v933_v35 = vadd.f32 %v3472_v39, %v915_v14 }
 0x32e   :  { %v2971_v20 = vadd.f32 %v846_v55, %v3466_v27 }
 0x32f   :  { %v1977_v19 = vmul.f32 -1.442695, %v2970_v50 }
 0x330   :  { %v1978_v25 = vmul.f32 -1.442695, %v2971_v20 }
 0x331   :  { %3031 = vpow2.f32 %v1977_v19 }
 0x332   :  { %3033 = vpow2.f32 %v1978_v25 }
 0x33b   :  { %v3032_v28 = vpop.eup %3031 }
 0x33c   :  { %v923_v30 = vadd.f32 1.0, %v3032_v28  ;;  %v3034_v31 = vpop.eup %3033 }
 0x33d   :  { %v930_v44 = vadd.f32 1.0, %v3034_v31 }
 0x33e   :  { %3035 = vrcp.f32 %v923_v30 }
 0x348   :  { %v3036_v36 = vpop.eup %3035 }
 0x349   :  { %v934_v37 = vmul.f32 %v3036_v36, %v933_v35 }
 0x34b   :  { %v935_v40 = vadd.f32 %v934_v37, %v3453_v61  ;;  %v1123_v37 = vpop.permute.xlu1 %1122 }
 0x34c   :  { %vm1124_vm13 = vcmp.eq.s32.totalorder %v1123_v37, 1 }
 0x34d   :  { %3037 = vtanh.f32 %v935_v40 }
 0x34e   :  { %3039 = vrcp.f32 %v930_v44 }
 0x357   :  { %v3038_v57 = vpop.eup %3037 }
 0x358   :  { %v937_v45 = vsub.f32 %v3526_v10, %v3038_v57  ;;  %v3040_v1 = vpop.eup %3039 }
 0x35a   :  { %v938_v48 = vmul.f32 %v3040_v1, %v937_v45 }
 0x35c   :  { %v939_v51 = vadd.f32 %v3038_v57, %v938_v48 }
 0x35e   :  { %v3571_v56 = vsel %vm947_vm12, %v939_v51, %v3526_v10 }
 0x35f   :  { %1020 = vmatmul.mubr.f32.vlgmr.msra.gmra.mrb[6].mxu0 %v3571_v56  ;;  %2309 = vmatmul.mubr.f32.vlgmr.msra.gmra.mrb[14].mxu1 %v3571_v56 }
 0x360   :  { %2721 = vmatpush1.bf16.msra.mxu0 %v3264_v16  ;;  %2752 = vmatpush3.bf16.msra.mxu1 %v3298_v41 }
 0x361   :  { %2723 = vmatprep.subr.bf16.mxu0 %v3267_v17  ;;  %2753 = vmatprep.subr.bf16.mxu1 %v3171_v49 }
 0x362   :  { %1196 = vmatprep.mubr.f32.mxu0 %v3169_v0  ;;  %2343 = vmatprep.mubr.msk.f32.mxu1 %vm3172_vm5, %v3169_v0 }
 0x364   :  { %2725 = vmatpush1.bf16.msra.mxu0 %v3275_v23  ;;  %2755 = vmatpush3.bf16.msra.mxu1 %v3317_v53 }
 0x365   :  { %2727 = vmatprep.subr.bf16.mxu0 %v3278_v24  ;;  %2756 = vmatprep.subr.bf16.mxu1 %v3171_v49 }
 0x368   :  { %2729 = vmatpush1.bf16.msra.mxu0 %v3292_v32  ;;  %2758 = vmatpush3.bf16.msra.mxu1 %v3336_v63 }
 0x369   :  { %2731 = vmatprep.subr.bf16.mxu0 %v3295_v34  ;;  %2759 = vmatprep.subr.bf16.mxu1 %v3171_v49 }
 0x36c   :  { %2733 = vmatpush1.bf16.msra.mxu0 %v3305_v43  ;;  %2761 = vmatpush3.bf16.msra.mxu1 %v3354_v12 }
 0x36d   :  { %2735 = vmatprep.subr.bf16.mxu0 %v3308_v46  ;;  %2762 = vmatprep.subr.bf16.mxu1 %v3171_v49 }
 0x370   :  { %2737 = vmatpush1.bf16.msra.mxu0 %v3321_v54  ;;  %2764 = vmatpush3.bf16.msra.mxu1 %v3372_v26 }
 0x371   :  { %2739 = vmatprep.subr.bf16.mxu0 %v3329_v58  ;;  %2765 = vmatprep.subr.bf16.mxu1 %v3171_v49 }
 0x374   :  { %2741 = vmatpush1.bf16.msra.mxu0 %v3344_v4  ;;  %2767 = vmatpush3.bf16.msra.mxu1 %v3388_v33 }
 0x375   :  { %2743 = vmatprep.subr.bf16.mxu0 %v3348_v7  ;;  %2768 = vmatprep.subr.bf16.mxu1 %v3171_v49 }
 0x378   :  { %2745 = vmatpush1.bf16.msra.mxu0 %v3362_v18  ;;  %2770 = vmatpush3.bf16.msra.mxu1 %v3398_v38 }
 0x379   :  { %2747 = vmatprep.subr.bf16.mxu0 %v3366_v21  ;;  %2771 = vmatprep.subr.bf16.mxu1 %v3171_v49 }
 0x37c   :  { %2749 = vmatpush1.bf16.msra.mxu0 %v3380_v29  ;;  %2773 = vmatpush3.bf16.msra.mxu1 %v3407_v42 }
 0x37d   :  { %2775 = vmatprep.subr.bf16.mxu0 %v3262_v13  ;;  %2806 = vmatprep.subr.bf16.mxu1 %v3171_v49 }
 0x432   :  { %v1021_v61 = vpop.f32.mrb[6].mxu0  ;;  %v1092_v60 = vpop.f32.mrb[14].mxu1 }
 0x433   :  { %v2972_v62 = vadd.f32 %v1021_v61, %v3457_v6  ;;  %v1023_v2 = vpop.f32.mrb[7].mxu0  ;;  %v2310_v5 = vpop.f32.mrb[15].mxu1  ;;  %v1110_v15 = vadd.f32 %v3472_v39, %v1092_v60 }
 0x434   :  { %v2973_v10 = vadd.f32 %v1023_v2, %v3466_v27 }
 0x435   :  { %v1979_v9 = vmul.f32 -1.442695, %v2972_v62 }
 0x436   :  { %v1980_v52 = vmul.f32 -1.442695, %v2973_v10 }
 0x437   :  { %3041 = vpow2.f32 %v1979_v9 }
 0x438   :  { %3043 = vpow2.f32 %v1980_v52 }
 0x441   :  { %v3042_v14 = vpop.eup %3041 }
 0x442   :  { %v1100_v50 = vadd.f32 1.0, %v3042_v14  ;;  %v3044_v55 = vpop.eup %3043 }
 0x443   :  { %v1107_v28 = vadd.f32 1.0, %v3044_v55 }
 0x444   :  { %3045 = vrcp.f32 %v1100_v50 }
 0x44e   :  { %v3046_v19 = vpop.eup %3045 }
 0x44f   :  { %v1111_v20 = vmul.f32 %v3046_v19, %v1110_v15  ;;  %v1300_v19 = vpop.permute.xlu0 %1299 }
 0x450   :  { %vm1301_vm14 = vcmp.eq.s32.totalorder %v1300_v19, 1  ;;  %v1845_v19 = vld [vmem:[#allocation7 + $0x30] sm:$0xff] }
 0x451   :  { %v1112_v25 = vadd.f32 %v1111_v20, %v3451_v59 }
 0x453   :  { %3047 = vtanh.f32 %v1112_v25 }
 0x454   :  { %3049 = vrcp.f32 %v1107_v28 }
 0x45d   :  { %v3048_v30 = vpop.eup %3047 }
 0x45e   :  { %v1114_v31 = vsub.f32 %v3571_v56, %v3048_v30  ;;  %v3050_v35 = vpop.eup %3049 }
 0x460   :  { %v1115_v36 = vmul.f32 %v3050_v35, %v1114_v31 }
 0x462   :  { %v1116_v40 = vadd.f32 %v3048_v30, %v1115_v36 }
 0x464   :  { %v3616_v44 = vsel %vm1124_vm13, %v1116_v40, %v3571_v56 }
 0x465   :  { %1197 = vmatmul.mubr.f32.vlgmr.msra.gmra.mrb[8].mxu0 %v3616_v44  ;;  %2344 = vmatmul.mubr.f32.vlgmr.msra.gmra.mrb[16].mxu1 %v3616_v44 }
 0x466   :  { %2777 = vmatpush1.bf16.msra.mxu0 %v3264_v16  ;;  %2808 = vmatpush3.bf16.msra.mxu1 %v3298_v41 }
 0x467   :  { %2779 = vmatprep.subr.bf16.mxu0 %v3267_v17  ;;  %2809 = vmatprep.subr.bf16.mxu1 %v3171_v49 }
 0x468   :  { %1373 = vmatprep.mubr.f32.mxu0 %v3169_v0  ;;  %2378 = vmatprep.mubr.msk.f32.mxu1 %vm3172_vm5, %v3169_v0 }
 0x46a   :  { %2781 = vmatpush1.bf16.msra.mxu0 %v3275_v23  ;;  %2811 = vmatpush3.bf16.msra.mxu1 %v3317_v53 }
 0x46b   :  { %2783 = vmatprep.subr.bf16.mxu0 %v3278_v24  ;;  %2812 = vmatprep.subr.bf16.mxu1 %v3171_v49 }
 0x46e   :  { %2785 = vmatpush1.bf16.msra.mxu0 %v3292_v32  ;;  %2814 = vmatpush3.bf16.msra.mxu1 %v3336_v63 }
 0x46f   :  { %2787 = vmatprep.subr.bf16.mxu0 %v3295_v34  ;;  %2815 = vmatprep.subr.bf16.mxu1 %v3171_v49 }
 0x472   :  { %2789 = vmatpush1.bf16.msra.mxu0 %v3305_v43  ;;  %2817 = vmatpush3.bf16.msra.mxu1 %v3354_v12 }
 0x473   :  { %2791 = vmatprep.subr.bf16.mxu0 %v3308_v46  ;;  %2818 = vmatprep.subr.bf16.mxu1 %v3171_v49 }
 0x476   :  { %2793 = vmatpush1.bf16.msra.mxu0 %v3321_v54  ;;  %2820 = vmatpush3.bf16.msra.mxu1 %v3372_v26 }
 0x477   :  { %2795 = vmatprep.subr.bf16.mxu0 %v3329_v58  ;;  %2821 = vmatprep.subr.bf16.mxu1 %v3171_v49 }
 0x47a   :  { %2797 = vmatpush1.bf16.msra.mxu0 %v3344_v4  ;;  %2823 = vmatpush3.bf16.msra.mxu1 %v3388_v33 }
 0x47b   :  { %2799 = vmatprep.subr.bf16.mxu0 %v3348_v7  ;;  %2824 = vmatprep.subr.bf16.mxu1 %v3171_v49 }
 0x47e   :  { %2801 = vmatpush1.bf16.msra.mxu0 %v3362_v18  ;;  %2826 = vmatpush3.bf16.msra.mxu1 %v3398_v38 }
 0x47f   :  { %2803 = vmatprep.subr.bf16.mxu0 %v3366_v21  ;;  %2827 = vmatprep.subr.bf16.mxu1 %v3171_v49 }
 0x482   :  { %2805 = vmatpush1.bf16.msra.mxu0 %v3380_v29  ;;  %2829 = vmatpush3.bf16.msra.mxu1 %v3407_v42 }
 0x483   :  { %2831 = vmatprep.subr.bf16.mxu0 %v3262_v13  ;;  %2862 = vmatprep.subr.bf16.mxu1 %v3171_v49 }
 0x538   :  { %v1198_v59 = vpop.f32.mrb[8].mxu0  ;;  %v1269_v57 = vpop.f32.mrb[16].mxu1 }
 0x539   :  { %v2974_v45 = vadd.f32 %v1198_v59, %v3457_v6  ;;  %v1200_v1 = vpop.f32.mrb[9].mxu0  ;;  %v2345_v47 = vpop.f32.mrb[17].mxu1  ;;  %v1287_v2 = vadd.f32 %v3472_v39, %v1269_v57 }
 0x53a   :  { %v2975_v51 = vadd.f32 %v1200_v1, %v3466_v27 }
 0x53b   :  { %v1981_v48 = vmul.f32 -1.442695, %v2974_v45 }
 0x53c   :  { %v1982_v56 = vmul.f32 -1.442695, %v2975_v51 }
 0x53d   :  { %3051 = vpow2.f32 %v1981_v48 }
 0x53e   :  { %3053 = vpow2.f32 %v1982_v56 }
 0x547   :  { %v3052_v61 = vpop.eup %3051 }
 0x548   :  { %v1277_v60 = vadd.f32 1.0, %v3052_v61  ;;  %v3054_v62 = vpop.eup %3053 }
 0x549   :  { %v1284_v52 = vadd.f32 1.0, %v3054_v62  ;;  %v1477_v62 = vpop.permute.xlu1 %1476 }
 0x54a   :  { %3055 = vrcp.f32 %v1277_v60  ;;  %vm1478_vm15 = vcmp.eq.s32.totalorder %v1477_v62, 1 }
 0x554   :  { %v3056_v5 = vpop.eup %3055 }
 0x555   :  { %v1288_v9 = vmul.f32 %v3056_v5, %v1287_v2 }
 0x557   :  { %v1289_v10 = vadd.f32 %v1288_v9, %v3459_v8 }
 0x559   :  { %3057 = vtanh.f32 %v1289_v10  ;;  %v1841_v10 = vld [vmem:[#allocation7 + $0x10] sm:$0xff] }
 0x55a   :  { %3059 = vrcp.f32 %v1284_v52  ;;  %v1842_v52 = vld [vmem:[#allocation7 + $0x18] sm:$0xff] }
 0x563   :  { %v3058_v14 = vpop.eup %3057 }
 0x564   :  { %v1291_v50 = vsub.f32 %v3616_v44, %v3058_v14  ;;  %v3060_v55 = vpop.eup %3059 }
 0x566   :  { %v1292_v15 = vmul.f32 %v3060_v55, %v1291_v50  ;;  %v1843_v50 = vld [vmem:[#allocation7 + $0x20] sm:$0xff]  ;;  %v1844_v55 = vld [vmem:[#allocation7 + $0x28] sm:$0xff] }
 0x568   :  { %v1293_v20 = vadd.f32 %v3058_v14, %v1292_v15  ;;  %v2946_v14 = vpack.c.bf16 %v1842_v52, %v1841_v10  ;;  %v2949_v15 = vpack.c.bf16 %v1844_v55, %v1843_v50 }
 0x56a   :  { %v3661_v25 = vsel %vm1301_vm14, %v1293_v20, %v3616_v44 }
 0x56b   :  { %1374 = vmatmul.mubr.f32.vlgmr.msra.gmra.mrb[10].mxu0 %v3661_v25  ;;  %2379 = vmatmul.mubr.f32.vlgmr.msra.gmra.mrb[18].mxu1 %v3661_v25 }
 0x56c   :  { %2833 = vmatpush1.bf16.msra.mxu0 %v3264_v16  ;;  %2864 = vmatpush3.bf16.msra.mxu1 %v3298_v41 }
 0x56d   :  { %2835 = vmatprep.subr.bf16.mxu0 %v3267_v17  ;;  %2865 = vmatprep.subr.bf16.mxu1 %v3171_v49 }
 0x56e   :  { %1550 = vmatprep.mubr.f32.mxu0 %v3169_v0  ;;  %2413 = vmatprep.mubr.msk.f32.mxu1 %vm3172_vm5, %v3169_v0 }
 0x570   :  { %2837 = vmatpush1.bf16.msra.mxu0 %v3275_v23  ;;  %2867 = vmatpush3.bf16.msra.mxu1 %v3317_v53 }
 0x571   :  { %2839 = vmatprep.subr.bf16.mxu0 %v3278_v24  ;;  %2868 = vmatprep.subr.bf16.mxu1 %v3171_v49 }
 0x574   :  { %2841 = vmatpush1.bf16.msra.mxu0 %v3292_v32  ;;  %2870 = vmatpush3.bf16.msra.mxu1 %v3336_v63 }
 0x575   :  { %2843 = vmatprep.subr.bf16.mxu0 %v3295_v34  ;;  %2871 = vmatprep.subr.bf16.mxu1 %v3171_v49 }
 0x578   :  { %2845 = vmatpush1.bf16.msra.mxu0 %v3305_v43  ;;  %2873 = vmatpush3.bf16.msra.mxu1 %v3354_v12 }
 0x579   :  { %2847 = vmatprep.subr.bf16.mxu0 %v3308_v46  ;;  %2874 = vmatprep.subr.bf16.mxu1 %v3171_v49 }
 0x57c   :  { %2849 = vmatpush1.bf16.msra.mxu0 %v3321_v54  ;;  %2876 = vmatpush3.bf16.msra.mxu1 %v3372_v26 }
 0x57d   :  { %2851 = vmatprep.subr.bf16.mxu0 %v3329_v58  ;;  %2877 = vmatprep.subr.bf16.mxu1 %v3171_v49 }
 0x580   :  { %2853 = vmatpush1.bf16.msra.mxu0 %v3344_v4  ;;  %2879 = vmatpush3.bf16.msra.mxu1 %v3388_v33 }
 0x581   :  { %2855 = vmatprep.subr.bf16.mxu0 %v3348_v7  ;;  %2880 = vmatprep.subr.bf16.mxu1 %v3171_v49 }
 0x584   :  { %2857 = vmatpush1.bf16.msra.mxu0 %v3362_v18  ;;  %2882 = vmatpush3.bf16.msra.mxu1 %v3398_v38 }
 0x585   :  { %2859 = vmatprep.subr.bf16.mxu0 %v3366_v21  ;;  %2883 = vmatprep.subr.bf16.mxu1 %v3171_v49 }
 0x588   :  { %2861 = vmatpush1.bf16.msra.mxu0 %v3380_v29  ;;  %2885 = vmatpush3.bf16.msra.mxu1 %v3407_v42 }
 0x589   :  { %2887 = vmatprep.subr.bf16.mxu0 %v3262_v13  ;;  %2918 = vmatprep.subr.bf16.mxu1 %v3171_v49 }
 0x63e   :  { %v1375_v8 = vpop.f32.mrb[10].mxu0  ;;  %v1446_v28 = vpop.f32.mrb[18].mxu1 }
 0x63f   :  { %v2976_v30 = vadd.f32 %v1375_v8, %v3457_v6  ;;  %v1377_v31 = vpop.f32.mrb[11].mxu0  ;;  %v2380_v35 = vpop.f32.mrb[19].mxu1  ;;  %v1464_v13 = vadd.f32 %v3472_v39, %v1446_v28  ;;  %v1848_v8 = vld [vmem:[#allocation7 + $0x48] sm:$0xff]  ;;  %v1849_v28 = vld [vmem:[#allocation7 + $0x50] sm:$0xff] }
 0x640   :  { %v2977_v37 = vadd.f32 %v1377_v31, %v3466_v27  ;;  %v1850_v31 = vld [vmem:[#allocation7 + $0x58] sm:$0xff] }
 0x641   :  { %v1983_v36 = vmul.f32 -1.442695, %v2976_v30  ;;  %v2958_v35 = vpack.c.bf16 %v1850_v31, %v1849_v28 }
 0x642   :  { %v1984_v40 = vmul.f32 -1.442695, %v2977_v37  ;;  %v1852_v37 = vld [vmem:[#allocation7 + $0x68] sm:$0xff] }
 0x643   :  { %3061 = vpow2.f32 %v1983_v36  ;;  %v1851_v36 = vld [vmem:[#allocation7 + $0x60] sm:$0xff] }
 0x644   :  { %3063 = vpow2.f32 %v1984_v40  ;;  %v2961_v40 = vpack.c.bf16 %v1852_v37, %v1851_v36 }
 0x64d   :  { %v3062_v44 = vpop.eup %3061 }
 0x64e   :  { %v1454_v59 = vadd.f32 1.0, %v3062_v44  ;;  %v3064_v57 = vpop.eup %3063  ;;  %v1853_v44 = vld [vmem:[#allocation7 + $0x70] sm:$0xff] }
 0x64f   :  { %v1461_v48 = vadd.f32 1.0, %v3064_v57 }
 0x650   :  { %3065 = vrcp.f32 %v1454_v59  ;;  %v1854_v59 = vld [vmem:[#allocation7 + $0x78] sm:$0xff] }
 0x651   :  { %v2964_v57 = vpack.c.bf16 %v1854_v59, %v1853_v44 }
 0x65a   :  { %v3066_v45 = vpop.eup %3065 }
 0x65b   :  { %v1465_v1 = vmul.f32 %v3066_v45, %v1464_v13 }
 0x65d   :  { %v1466_v47 = vadd.f32 %v1465_v1, %v3455_v3  ;;  %v1839_v3 = vld [vmem:[#allocation7] sm:$0xff] }
 0x65f   :  { %3067 = vtanh.f32 %v1466_v47 }
 0x660   :  { %3069 = vrcp.f32 %v1461_v48 }
 0x669   :  { %v3068_v51 = vpop.eup %3067 }
 0x66a   :  { %v1468_v56 = vsub.f32 %v3661_v25, %v3068_v51  ;;  %v3070_v61 = vpop.eup %3069 }
 0x66c   :  { %v1469_v60 = vmul.f32 %v3070_v61, %v1468_v56 }
 0x66e   :  { %v1470_v2 = vadd.f32 %v3068_v51, %v1469_v60 }
 0x670   :  { %v3706_v5 = vsel %vm1478_vm15, %v1470_v2, %v3661_v25  ;;  %v1847_v25 = vld [vmem:[#allocation7 + $0x40] sm:$0xff] }
 0x671   :  { %1551 = vmatmul.mubr.f32.vlgmr.msra.gmra.mrb[12].mxu0 %v3706_v5  ;;  %2414 = vmatmul.mubr.f32.vlgmr.msra.gmra.mrb[20].mxu1 %v3706_v5  ;;  %v2955_v30 = vpack.c.bf16 %v1848_v8, %v1847_v25 }
 0x672   :  { %2889 = vmatpush1.bf16.msra.mxu0 %v3264_v16  ;;  %2920 = vmatpush3.bf16.msra.mxu1 %v3298_v41 }
 0x673   :  { %2891 = vmatprep.subr.bf16.mxu0 %v3267_v17  ;;  %2921 = vmatprep.subr.bf16.mxu1 %v3171_v49 }
 0x674   :  { %1727 = vmatprep.mubr.f32.mxu0 %v3169_v0  ;;  %2448 = vmatprep.mubr.msk.f32.mxu1 %vm3172_vm5, %v3169_v0 }
 0x676   :  { %2893 = vmatpush1.bf16.msra.mxu0 %v3275_v23  ;;  %2923 = vmatpush3.bf16.msra.mxu1 %v3317_v53 }
 0x677   :  { %2895 = vmatprep.subr.bf16.mxu0 %v3278_v24  ;;  %2924 = vmatprep.subr.bf16.mxu1 %v3171_v49 }
 0x67a   :  { %2897 = vmatpush1.bf16.msra.mxu0 %v3292_v32  ;;  %2926 = vmatpush3.bf16.msra.mxu1 %v3336_v63 }
 0x67b   :  { %2899 = vmatprep.subr.bf16.mxu0 %v3295_v34  ;;  %2927 = vmatprep.subr.bf16.mxu1 %v3171_v49 }
 0x67e   :  { %2901 = vmatpush1.bf16.msra.mxu0 %v3305_v43  ;;  %2929 = vmatpush3.bf16.msra.mxu1 %v3354_v12 }
 0x67f   :  { %2903 = vmatprep.subr.bf16.mxu0 %v3308_v46  ;;  %2930 = vmatprep.subr.bf16.mxu1 %v3171_v49 }
 0x682   :  { %2905 = vmatpush1.bf16.msra.mxu0 %v3321_v54  ;;  %2932 = vmatpush3.bf16.msra.mxu1 %v3372_v26 }
 0x683   :  { %2907 = vmatprep.subr.bf16.mxu0 %v3329_v58  ;;  %2933 = vmatprep.subr.bf16.mxu1 %v3171_v49 }
 0x686   :  { %2909 = vmatpush1.bf16.msra.mxu0 %v3344_v4  ;;  %2935 = vmatpush3.bf16.msra.mxu1 %v3388_v33 }
 0x687   :  { %2911 = vmatprep.subr.bf16.mxu0 %v3348_v7  ;;  %2936 = vmatprep.subr.bf16.mxu1 %v3171_v49 }
 0x68a   :  { %2913 = vmatpush1.bf16.msra.mxu0 %v3362_v18  ;;  %2938 = vmatpush3.bf16.msra.mxu1 %v3398_v38 }
 0x68b   :  { %2915 = vmatprep.subr.bf16.mxu0 %v3366_v21  ;;  %2939 = vmatprep.subr.bf16.mxu1 %v3171_v49 }
 0x68e   :  { %2917 = vmatpush1.bf16.msra.mxu0 %v3380_v29  ;;  %2941 = vmatpush3.bf16.msra.mxu1 %v3407_v42  ;;  %v1654_v29 = vpop.permute.xlu0 %1653 }
 0x68f   :  { %2942 = vmatprep.subr.bf16.mxu0 %v3171_v49  ;;  %vm1655_vm0 = vcmp.eq.s32.totalorder %v1654_v29, 1 }
 0x744   :  { %v1552_v16 = vpop.f32.mrb[12].mxu0  ;;  %v1623_v17 = vpop.f32.mrb[20].mxu1 }
 0x745   :  { %v2978_v23 = vadd.f32 %v1552_v16, %v3457_v6  ;;  %v1554_v24 = vpop.f32.mrb[13].mxu0  ;;  %v2415_v32 = vpop.f32.mrb[21].mxu1  ;;  %v1641_v58 = vadd.f32 %v3472_v39, %v1623_v17 }
 0x746   :  { %v2979_v41 = vadd.f32 %v1554_v24, %v3466_v27 }
 0x747   :  { %v1985_v34 = vmul.f32 -1.442695, %v2978_v23 }
 0x748   :  { %v1986_v43 = vmul.f32 -1.442695, %v2979_v41 }
 0x749   :  { %3071 = vpow2.f32 %v1985_v34 }
 0x74a   :  { %3073 = vpow2.f32 %v1986_v43 }
 0x753   :  { %v3072_v46 = vpop.eup %3071 }
 0x754   :  { %v1631_v53 = vadd.f32 1.0, %v3072_v46  ;;  %v3074_v54 = vpop.eup %3073 }
 0x755   :  { %v1638_v12 = vadd.f32 1.0, %v3074_v54 }
 0x756   :  { %3075 = vrcp.f32 %v1631_v53 }
 0x760   :  { %v3076_v63 = vpop.eup %3075 }
 0x761   :  { %v1642_v4 = vmul.f32 %v3076_v63, %v1641_v58 }
 0x763   :  { %v1643_v7 = vadd.f32 %v1642_v4, %v3464_v22  ;;  %v1840_v22 = vld [vmem:[#allocation7 + $0x8] sm:$0xff] }
 0x764   :  { %v2943_v9 = vpack.c.bf16 %v1840_v22, %v1839_v3 }
 0x765   :  { %3077 = vtanh.f32 %v1643_v7 }
 0x766   :  { %3079 = vrcp.f32 %v1638_v12 }
 0x76f   :  { %v3078_v18 = vpop.eup %3077 }
 0x770   :  { %v1645_v21 = vsub.f32 %v3706_v5, %v3078_v18  ;;  %v3080_v26 = vpop.eup %3079 }
 0x772   :  { %v1646_v33 = vmul.f32 %v3080_v26, %v1645_v21 }
 0x774   :  { %v1647_v38 = vadd.f32 %v3078_v18, %v1646_v33 }
 0x776   :  { %v3750_v42 = vsel %vm1655_vm0, %v1647_v38, %v3706_v5 }
 0x777   :  { %1728 = vmatmul.mubr.f32.vlgmr.msra.gmra.mrb[14].mxu0 %v3750_v42  ;;  %2449 = vmatmul.mubr.f32.vlgmr.msra.gmra.mrb[22].mxu1 %v3750_v42 }
 0x778   :  { %2483 = vmatprep.mubr.msk.f32.mxu0 %vm3172_vm5, %v3169_v0  ;;  %2944 = vmatpush3.bf16.msra.mxu0 %v2943_v9  ;;  %v1846_v0 = vld [vmem:[#allocation7 + $0x38] sm:$0xff] }
 0x779   :  { %2945 = vmatprep.subr.bf16.mxu0 %v3171_v49  ;;  %v2952_v20 = vpack.c.bf16 %v1846_v0, %v1845_v19 }
 0x77c   :  { %2947 = vmatpush3.bf16.msra.mxu0 %v2946_v14 }
 0x77d   :  { %2948 = vmatprep.subr.bf16.mxu0 %v3171_v49 }
 0x780   :  { %2950 = vmatpush3.bf16.msra.mxu0 %v2949_v15 }
 0x781   :  { %2951 = vmatprep.subr.bf16.mxu0 %v3171_v49 }
 0x784   :  { %2953 = vmatpush3.bf16.msra.mxu0 %v2952_v20 }
 0x785   :  { %2954 = vmatprep.subr.bf16.mxu0 %v3171_v49 }
 0x788   :  { %2956 = vmatpush3.bf16.msra.mxu0 %v2955_v30 }
 0x789   :  { %2957 = vmatprep.subr.bf16.mxu0 %v3171_v49 }
 0x78c   :  { %2959 = vmatpush3.bf16.msra.mxu0 %v2958_v35 }
 0x78d   :  { %2960 = vmatprep.subr.bf16.mxu0 %v3171_v49 }
 0x790   :  { %2962 = vmatpush3.bf16.msra.mxu0 %v2961_v40 }
 0x791   :  { %2963 = vmatprep.subr.bf16.mxu0 %v3171_v49 }
 0x794   :  { %2965 = vmatpush3.bf16.msra.mxu0 %v2964_v57 }
 0x84a   :  { %v1729_v13 = vpop.f32.mrb[14].mxu0  ;;  %v1800_v45 = vpop.f32.mrb[22].mxu1 }
 0x84b   :  { %v2980_v1 = vadd.f32 %v1729_v13, %v3457_v6  ;;  %v1731_v47 = vpop.f32.mrb[15].mxu0  ;;  %v2450_v48 = vpop.f32.mrb[23].mxu1  ;;  %v1818_v5 = vadd.f32 %v3472_v39, %v1800_v45  ;;  %v1989_v39 = vld [vmem:[%s3791_s7] ss:$0 sm:$0xff] }
 0x84c   :  { %v2981_v56 = vadd.f32 %v1731_v47, %v3466_v27  ;;  %v1831_v27 = vpop.permute.xlu1 %1830 }
 0x84d   :  { %v1987_v51 = vmul.f32 -1.442695, %v2980_v1  ;;  %vm1832_vm1 = vcmp.eq.s32.totalorder %v1831_v27, 1 }
 0x84e   :  { %v1988_v61 = vmul.f32 -1.442695, %v2981_v56 }
 0x84f   :  { %3081 = vpow2.f32 %v1987_v51 }
 0x850   :  { %3083 = vpow2.f32 %v1988_v61 }
 0x859   :  { %v3082_v60 = vpop.eup %3081 }
 0x85a   :  { %v1808_v62 = vadd.f32 1.0, %v3082_v60  ;;  %v3084_v2 = vpop.eup %3083 }
 0x85b   :  { %v1815_v23 = vadd.f32 1.0, %v3084_v2 }
 0x85c   :  { %3085 = vrcp.f32 %v1808_v62 }
 0x866   :  { %v3086_v49 = vpop.eup %3085 }
 0x867   :  { %v1819_v16 = vmul.f32 %v3086_v49, %v1818_v5 }
 0x869   :  { %v1820_v17 = vadd.f32 %v1819_v16, %v3461_v11 }
 0x86b   :  { %3087 = vtanh.f32 %v1820_v17 }
 0x86c   :  { %3089 = vrcp.f32 %v1815_v23 }
 0x875   :  { %v3088_v6 = vpop.eup %3087 }
 0x876   :  { %v1822_v24 = vsub.f32 %v3750_v42, %v3088_v6  ;;  %v3090_v32 = vpop.eup %3089 }
 0x878   :  { %v1823_v34 = vmul.f32 %v3090_v32, %v1822_v24 }
 0x87a   :  { %v1824_v41 = vadd.f32 %v3088_v6, %v1823_v34 }
 0x87c   :  { %v1833_v43 = vsel %vm1832_vm1, %v1824_v41, %v3750_v42 }
 0x87d   :  { %2484 = vmatmul.mubr.f32.vlgmr.msra.gmra.mrb[16].mxu0 %v1833_v43 }
 0x950   :  { %v1928_v11 = vpop.f32.mrb[16].mxu0 }
 0x951   :  { %v1929_v46 = vadd.f32 %v1989_v39, %v1928_v11  ;;  %v2485_v53 = vpop.f32.mrb[17].mxu0 }
 0x953   :  { %1932 = vst [vmem:[#allocation9] sm:$0xff] %v1929_v46 }
 0x954   :  { %3146 = shalt.err (!%p3143_p6)
}
 0x955   :  { %s3147_s21 = scalar_lea.hbm %s3792_s8, 128 }
 0x956   :  { %p3148_p7 = scmp.ne.s32.totalorder %s3792_s8, %s3147_s21  ;;  %p3151_p8 = scmp.lt.u32.totalorder %s3147_s21, %s3792_s8 }
 0x958   :  { %p3153_p9 = pnand %p3151_p8, %p3148_p7 }
 0x95a   :  { %3156 = shalt.err (!%p3153_p9)
}
 0x95b   :  { %1942 = dma.vmem_to_hbm [thread:$0]  %s1940_s17, 128, %s3792_s8, [#allocation6]  }
 0x95c   :  { %3161 = dma.done.wait [#allocation6], 128  }
 0x95d   :  { %3162 = vsyncadd [#allocation6], 4294967168 }
 0x95e   :  { %1946 = vsyncpa [#allocation5], 1 }
 0x95f   :  { %1947 = vsyncpa [#allocation8], 1 }
 0x960   :  { %1948 = vsyncpa [#allocation6], 1 }

</bundles_post_ra>
